<compile_context>
chip_gen: v7x
topology: tpu7x:2x2x1
jax: 0.10.0
libtpu: 0.0.40
codegen_flags: <defaults>
</compile_context>

<pallas_src>
import functools

import jax
import jax.numpy as jnp
from jax.experimental import pallas as pl
from jax.experimental.pallas import tpu as pltpu  # noqa: F401  (TPU backend; kept for tuning)

# ---------------- small-BERT config ----------------
VOCAB = 100
TYPE_VOCAB = 2
MAX_POS = 16
HIDDEN = 64
NUM_HEADS = 4
HEAD_DIM = HIDDEN // NUM_HEADS
INTERMEDIATE = 128
NUM_LAYERS = 2
NUM_CLASSES = 3
LN_EPS = 1e-12
NEG_INF = -1e9


# ---------------- in-kernel helpers (traced inside the Pallas kernel) ----------------
def _mm(a, b):
    """MXU matmul: bf16 operands, f32 accumulation."""
    return jnp.dot(a.astype(jnp.bfloat16), b.astype(jnp.bfloat16),
                   preferred_element_type=jnp.float32)


def _mm_nt(a, b):
    """A @ B.T on the MXU (bf16 operands, f32 accumulation) without materializing B.T."""
    return jax.lax.dot_general(
        a.astype(jnp.bfloat16), b.astype(jnp.bfloat16),
        dimension_numbers=(((1,), (1,)), ((), ())),
        preferred_element_type=jnp.float32)


def _ln(x, g, b):
    """LayerNorm with f32 statistics (HF BERT eps)."""
    mu = jnp.mean(x, axis=-1, keepdims=True)
    d = x - mu
    var = jnp.mean(d * d, axis=-1, keepdims=True)
    return d * jax.lax.rsqrt(var + LN_EPS) * g + b


def _gelu(x):
    """Exact (erf) GELU, as in HF BERT."""
    return 0.5 * x * (1.0 + jax.lax.erf(x * 0.7071067811865476))


def _onehot_rows(idx, vocab):
    """(R,1) int32 indices -> (R, vocab) bf16 one-hot (gather-as-matmul helper)."""
    cols = jax.lax.broadcasted_iota(jnp.int32, (idx.shape[0], vocab), 1)
    return jnp.where(cols == idx, 1.0, 0.0).astype(jnp.bfloat16)


# ---------------- the fused whole-model kernel ----------------
def _bert_kernel(*refs, batch, seq, num_layers):
    out_ref = refs[-1]
    in_refs = refs[:-1]
    (ids_ref, pos_ref, tt_ref, bias_ref,
     wemb_ref, pemb_ref, temb_ref, eg_ref, eb_ref) = in_refs[:9]
    layer_refs = in_refs[9:9 + 12 * num_layers]
    pw_ref, pb_ref, cw_ref, cb_ref = in_refs[9 + 12 * num_layers:]

    bs = batch * seq

    # ---- embeddings: one-hot MXU gathers (word/pos) + binary select (token type) ----
    word = jnp.dot(_onehot_rows(ids_ref[...], VOCAB), wemb_ref[...],
                   preferred_element_type=jnp.float32)                     # (BS, H)
    pos = jnp.dot(_onehot_rows(pos_ref[...], MAX_POS), pemb_ref[...],
                  preferred_element_type=jnp.float32)                      # (BS, H)
    tt = tt_ref[...]                                                       # (BS, 1)
    typ = jnp.where(tt == 0,
                    temb_ref[0:1, :].astype(jnp.float32),
                    temb_ref[1:2, :].astype(jnp.float32))                  # (BS, H)
    h = _ln(word + pos + typ, eg_ref[...], eb_ref[...])                    # (BS, H) f32

    bias = bias_ref[...]                                                   # (NH*BS, NH*BS)

    for layer in range(num_layers):
        (qkv_w, qkv_b, ao_w, ao_b, ln1_g, ln1_b,
         fi_w, fi_b, fo_w, fo_b, ln2_g, ln2_b) = layer_refs[12 * layer:12 * (layer + 1)]

        # ---- fused QKV projection (1/sqrt(head_dim) folded into Q weights/bias) ----
        qkv = _mm(h, qkv_w[...]) + qkv_b[...]                              # (BS, 3H)

        # ---- head-major block layout: rows ordered (head, batch, seq) ----
        qb = jnp.concatenate(
            [qkv[:, hd * HEAD_DIM:(hd + 1) * HEAD_DIM] for hd in range(NUM_HEADS)], axis=0)
        kb = jnp.concatenate(
            [qkv[:, HIDDEN + hd * HEAD_DIM:HIDDEN + (hd + 1) * HEAD_DIM]
             for hd in range(NUM_HEADS)], axis=0)
        vb = jnp.concatenate(
            [qkv[:, 2 * HIDDEN + hd * HEAD_DIM:2 * HIDDEN + (hd + 1) * HEAD_DIM]
             for hd in range(NUM_HEADS)], axis=0)                          # (NH*BS, D)

        # ---- block-diagonal attention: one score matmul + one PV matmul for everything ----
        s = _mm_nt(qb, kb) + bias                                          # (NH*BS, NH*BS)
        s = s - jnp.max(s, axis=-1, keepdims=True)                         # stable softmax
        p = jnp.exp(s)
        p = p * pl.reciprocal(jnp.sum(p, axis=-1, keepdims=True), approx=True)
        ctx = _mm(p, vb)                                                   # (NH*BS, D)

        # un-block: (NH*BS, D) -> (BS, H), then fused output projection
        ctx = jnp.concatenate(
            [ctx[hd * bs:(hd + 1) * bs, :] for hd in range(NUM_HEADS)], axis=1)
        attn = _mm(ctx, ao_w[...]) + ao_b[...]                             # (BS, H)

        # ---- residual + LN, FFN(GELU), residual + LN ----
        h1 = _ln(h + attn, ln1_g[...], ln1_b[...])
        ff = _gelu(_mm(h1, fi_w[...]) + fi_b[...])                         # (BS, I)
        ff = _mm(ff, fo_w[...]) + fo_b[...]                                # (BS, H)
        h = _ln(h1 + ff, ln2_g[...], ln2_b[...])

    # ---- [CLS] rows -> BERT pooler(tanh) -> classification Linear ----
    cls = jnp.concatenate([h[b * seq:b * seq + 1, :] for b in range(batch)], axis=0)  # (B, H)
    pooled = jnp.tanh(_mm(cls, pw_ref[...]) + pb_ref[...])
    out_ref[...] = _mm(pooled, cw_ref[...]) + cb_ref[...]                  # (B, num_classes)


# ---------------- parameter init (deterministic, synthetic; matmul weights in bf16) ----------------
def init_params(key):
    keys = iter(jax.random.split(key, 64))

    def nrm(shape):
        return 0.02 * jax.random.normal(next(keys), shape, jnp.float32)

    scale = 1.0 / float(HEAD_DIM) ** 0.5

    params = {
        "word_emb": nrm((VOCAB, HIDDEN)).astype(jnp.bfloat16),
        "pos_emb": nrm((MAX_POS, HIDDEN)).astype(jnp.bfloat16),
        "type_emb": nrm((TYPE_VOCAB, HIDDEN)).astype(jnp.bfloat16),
        "emb_ln_g": jnp.ones((1, HIDDEN), jnp.float32),
        "emb_ln_b": jnp.zeros((1, HIDDEN), jnp.float32),
        "layers": [],
        "pool_w": nrm((HIDDEN, HIDDEN)).astype(jnp.bfloat16),
        "pool_b": jnp.zeros((1, HIDDEN), jnp.float32),
        "cls_w": nrm((HIDDEN, NUM_CLASSES)).astype(jnp.bfloat16),
        "cls_b": jnp.zeros((1, NUM_CLASSES), jnp.float32),
    }
    for _ in range(NUM_LAYERS):
        q_w, k_w, v_w = nrm((HIDDEN, HIDDEN)), nrm((HIDDEN, HIDDEN)), nrm((HIDDEN, HIDDEN))
        q_b = jnp.zeros((HIDDEN,), jnp.float32)
        k_b = jnp.zeros((HIDDEN,), jnp.float32)
        v_b = jnp.zeros((HIDDEN,), jnp.float32)
        params["layers"].append({
            # fused QKV weight/bias; 1/sqrt(head_dim) folded into the Q columns; bf16 weights
            "qkv_w": jnp.concatenate([q_w * scale, k_w, v_w], axis=1).astype(jnp.bfloat16),
            "qkv_b": jnp.concatenate([q_b * scale, k_b, v_b]).reshape(1, 3 * HIDDEN),
            "ao_w": nrm((HIDDEN, HIDDEN)).astype(jnp.bfloat16),
            "ao_b": jnp.zeros((1, HIDDEN), jnp.float32),
            "attn_ln_g": jnp.ones((1, HIDDEN), jnp.float32),
            "attn_ln_b": jnp.zeros((1, HIDDEN), jnp.float32),
            "fi_w": nrm((HIDDEN, INTERMEDIATE)).astype(jnp.bfloat16),
            "fi_b": jnp.zeros((1, INTERMEDIATE), jnp.float32),
            "fo_w": nrm((INTERMEDIATE, HIDDEN)).astype(jnp.bfloat16),
            "fo_b": jnp.zeros((1, HIDDEN), jnp.float32),
            "ffn_ln_g": jnp.ones((1, HIDDEN), jnp.float32),
            "ffn_ln_b": jnp.zeros((1, HIDDEN), jnp.float32),
        })
    return params


# ---------------- forward pass: one pallas_call for the whole model ----------------
def bert_forward(params, ids, mask, token_type_ids):
    B, S = ids.shape
    BS = B * S
    BNS = NUM_HEADS * BS

    # Tiny per-call input preprocessing (no gathers): flatten ids, static position ids,
    # and the additive attention bias for the head-major block-diagonal score matrix.
    ids2 = ids.reshape(BS, 1).astype(jnp.int32)
    tt2 = token_type_ids.reshape(BS, 1).astype(jnp.int32)
    pos2 = jnp.tile(jnp.arange(S, dtype=jnp.int32), B).reshape(BS, 1)

    add_mask = (1.0 - mask.astype(jnp.float32)) * NEG_INF                  # (B, S)
    col_bias = jnp.tile(add_mask.reshape(1, BS), (1, NUM_HEADS))           # (1, NH*B*S)
    blk = (jnp.arange(BNS)[:, None] // S) == (jnp.arange(BNS)[None, :] // S)
    attn_bias = jnp.where(blk, 0.0, NEG_INF) + col_bias                    # (BNS, BNS)

    kernel = functools.partial(_bert_kernel, batch=B, seq=S, num_layers=NUM_LAYERS)

    args = [ids2, pos2, tt2, attn_bias,
            params["word_emb"], params["pos_emb"], params["type_emb"],
            params["emb_ln_g"], params["emb_ln_b"]]
    for lp in params["layers"]:
        args += [lp["qkv_w"], lp["qkv_b"], lp["ao_w"], lp["ao_b"],
                 lp["attn_ln_g"], lp["attn_ln_b"],
                 lp["fi_w"], lp["fi_b"], lp["fo_w"], lp["fo_b"],
                 lp["ffn_ln_g"], lp["ffn_ln_b"]]
    args += [params["pool_w"], params["pool_b"], params["cls_w"], params["cls_b"]]

    return pl.pallas_call(
        kernel,
        out_shape=jax.ShapeDtypeStruct((B, NUM_CLASSES), jnp.float32),
    )(*args)


if __name__ == "__main__":
    key = jax.random.PRNGKey(0)
    pkey, ikey = jax.random.split(key)
    params = init_params(pkey)

    B, S = 2, 8
    ids = jax.random.randint(ikey, (B, S), 0, VOCAB, dtype=jnp.int32)
    mask = jnp.ones((B, S), dtype=jnp.int32).at[1, 6:].set(0)              # pad last 2 tokens of ex 1
    token_type_ids = jnp.zeros((B, S), dtype=jnp.int32).at[:, 4:].set(1)

    fwd = jax.jit(bert_forward)
    logits = jax.block_until_ready(fwd(params, ids, mask, token_type_ids))
    assert logits.shape == (B, NUM_CLASSES)
    assert bool(jnp.all(jnp.isfinite(logits)))
    print("KERNEL_OK")
</pallas_src>

<mosaic_0001>
module attributes {stable_mosaic.version = 11 : i64} {
  func.func @_bert_kernel(%arg0: memref<16x1xi32, #tpu.memory_space<vmem>>, %arg1: memref<16x1xi32, #tpu.memory_space<vmem>>, %arg2: memref<16x1xi32, #tpu.memory_space<vmem>>, %arg3: memref<64x64xf32, #tpu.memory_space<vmem>>, %arg4: memref<100x64xbf16, #tpu.memory_space<vmem>>, %arg5: memref<16x64xbf16, #tpu.memory_space<vmem>>, %arg6: memref<2x64xbf16, #tpu.memory_space<vmem>>, %arg7: memref<1x64xf32, #tpu.memory_space<vmem>>, %arg8: memref<1x64xf32, #tpu.memory_space<vmem>>, %arg9: memref<64x192xbf16, #tpu.memory_space<vmem>>, %arg10: memref<1x192xf32, #tpu.memory_space<vmem>>, %arg11: memref<64x64xbf16, #tpu.memory_space<vmem>>, %arg12: memref<1x64xf32, #tpu.memory_space<vmem>>, %arg13: memref<1x64xf32, #tpu.memory_space<vmem>>, %arg14: memref<1x64xf32, #tpu.memory_space<vmem>>, %arg15: memref<64x128xbf16, #tpu.memory_space<vmem>>, %arg16: memref<1x128xf32, #tpu.memory_space<vmem>>, %arg17: memref<128x64xbf16, #tpu.memory_space<vmem>>, %arg18: memref<1x64xf32, #tpu.memory_space<vmem>>, %arg19: memref<1x64xf32, #tpu.memory_space<vmem>>, %arg20: memref<1x64xf32, #tpu.memory_space<vmem>>, %arg21: memref<64x192xbf16, #tpu.memory_space<vmem>>, %arg22: memref<1x192xf32, #tpu.memory_space<vmem>>, %arg23: memref<64x64xbf16, #tpu.memory_space<vmem>>, %arg24: memref<1x64xf32, #tpu.memory_space<vmem>>, %arg25: memref<1x64xf32, #tpu.memory_space<vmem>>, %arg26: memref<1x64xf32, #tpu.memory_space<vmem>>, %arg27: memref<64x128xbf16, #tpu.memory_space<vmem>>, %arg28: memref<1x128xf32, #tpu.memory_space<vmem>>, %arg29: memref<128x64xbf16, #tpu.memory_space<vmem>>, %arg30: memref<1x64xf32, #tpu.memory_space<vmem>>, %arg31: memref<1x64xf32, #tpu.memory_space<vmem>>, %arg32: memref<1x64xf32, #tpu.memory_space<vmem>>, %arg33: memref<64x64xbf16, #tpu.memory_space<vmem>>, %arg34: memref<1x64xf32, #tpu.memory_space<vmem>>, %arg35: memref<64x3xbf16, #tpu.memory_space<vmem>>, %arg36: memref<1x3xf32, #tpu.memory_space<vmem>>, %arg37: memref<2x3xf32, #tpu.memory_space<vmem>>) attributes {dimension_semantics = [], scalar_prefetch = 0 : i64, scratch_operands = 0 : i64, tpu.core_type = #tpu.core_type<tc>} {
    %c0 = arith.constant 0 : index
    %c0_0 = arith.constant 0 : index
    %0 = vector.load %arg0[%c0, %c0_0] : memref<16x1xi32, #tpu.memory_space<vmem>>, vector<16x1xi32>
    %1 = tpu.iota {dimensions = array<i32: 1>} : vector<16x100xi32>
    %2 = vector.broadcast %0 : vector<16x1xi32> to vector<16x100xi32>
    %3 = arith.cmpi eq, %1, %2 : vector<16x100xi32>
    %cst = arith.constant 1.000000e+00 : f32
    %cst_1 = arith.constant 0.000000e+00 : f32
    %4 = vector.broadcast %cst : f32 to vector<16x100xf32>
    %5 = vector.broadcast %cst_1 : f32 to vector<16x100xf32>
    %6 = arith.select %3, %4, %5 : vector<16x100xi1>, vector<16x100xf32>
    %7 = arith.truncf %6 : vector<16x100xf32> to vector<16x100xbf16>
    %c0_2 = arith.constant 0 : index
    %c0_3 = arith.constant 0 : index
    %8 = vector.load %arg4[%c0_2, %c0_3] : memref<100x64xbf16, #tpu.memory_space<vmem>>, vector<100x64xbf16>
    %cst_4 = arith.constant dense<0.000000e+00> : vector<16x64xf32>
    %9 = tpu.matmul %7, %8, %cst_4 {dimension_numbers = #tpu.dot_dimension_numbers<[1], [0], [0], [1], [0, 0, 1, 1], [], []>} : vector<16x100xbf16>, vector<100x64xbf16>, vector<16x64xf32> -> vector<16x64xf32>
    %c0_5 = arith.constant 0 : index
    %c0_6 = arith.constant 0 : index
    %10 = vector.load %arg1[%c0_5, %c0_6] : memref<16x1xi32, #tpu.memory_space<vmem>>, vector<16x1xi32>
    %11 = tpu.iota {dimensions = array<i32: 1>} : vector<16x16xi32>
    %12 = vector.broadcast %10 : vector<16x1xi32> to vector<16x16xi32>
    %13 = arith.cmpi eq, %11, %12 : vector<16x16xi32>
    %cst_7 = arith.constant 1.000000e+00 : f32
    %cst_8 = arith.constant 0.000000e+00 : f32
    %14 = vector.broadcast %cst_7 : f32 to vector<16x16xf32>
    %15 = vector.broadcast %cst_8 : f32 to vector<16x16xf32>
    %16 = arith.select %13, %14, %15 : vector<16x16xi1>, vector<16x16xf32>
    %17 = arith.truncf %16 : vector<16x16xf32> to vector<16x16xbf16>
    %c0_9 = arith.constant 0 : index
    %c0_10 = arith.constant 0 : index
    %18 = vector.load %arg5[%c0_9, %c0_10] : memref<16x64xbf16, #tpu.memory_space<vmem>>, vector<16x64xbf16>
    %cst_11 = arith.constant dense<0.000000e+00> : vector<16x64xf32>
    %19 = tpu.matmul %17, %18, %cst_11 {dimension_numbers = #tpu.dot_dimension_numbers<[1], [0], [0], [1], [0, 0, 1, 1], [], []>} : vector<16x16xbf16>, vector<16x64xbf16>, vector<16x64xf32> -> vector<16x64xf32>
    %c0_12 = arith.constant 0 : index
    %c0_13 = arith.constant 0 : index
    %20 = vector.load %arg2[%c0_12, %c0_13] : memref<16x1xi32, #tpu.memory_space<vmem>>, vector<16x1xi32>
    %c0_i32 = arith.constant 0 : i32
    %21 = vector.broadcast %c0_i32 : i32 to vector<16x1xi32>
    %22 = arith.cmpi eq, %20, %21 : vector<16x1xi32>
    %c0_14 = arith.constant 0 : index
    %c0_15 = arith.constant 0 : index
    %23 = vector.load %arg6[%c0_14, %c0_15] : memref<2x64xbf16, #tpu.memory_space<vmem>>, vector<1x64xbf16>
    %24 = arith.extf %23 : vector<1x64xbf16> to vector<1x64xf32>
    %c1 = arith.constant 1 : index
    %c0_16 = arith.constant 0 : index
    %25 = vector.load %arg6[%c1, %c0_16] : memref<2x64xbf16, #tpu.memory_space<vmem>>, vector<1x64xbf16>
    %26 = arith.extf %25 : vector<1x64xbf16> to vector<1x64xf32>
    %27 = vector.shape_cast %22 : vector<16x1xi1> to vector<16x1xi1>
    %28 = vector.broadcast %27 : vector<16x1xi1> to vector<16x64xi1>
    %29 = vector.shape_cast %24 : vector<1x64xf32> to vector<1x64xf32>
    %30 = vector.broadcast %29 : vector<1x64xf32> to vector<16x64xf32>
    %31 = vector.shape_cast %26 : vector<1x64xf32> to vector<1x64xf32>
    %32 = vector.broadcast %31 : vector<1x64xf32> to vector<16x64xf32>
    %33 = arith.select %28, %30, %32 : vector<16x64xi1>, vector<16x64xf32>
    %34 = arith.addf %9, %19 : vector<16x64xf32>
    %35 = arith.addf %34, %33 : vector<16x64xf32>
    %c0_17 = arith.constant 0 : index
    %c0_18 = arith.constant 0 : index
    %36 = vector.load %arg7[%c0_17, %c0_18] : memref<1x64xf32, #tpu.memory_space<vmem>>, vector<1x64xf32>
    %c0_19 = arith.constant 0 : index
    %c0_20 = arith.constant 0 : index
    %37 = vector.load %arg8[%c0_19, %c0_20] : memref<1x64xf32, #tpu.memory_space<vmem>>, vector<1x64xf32>
    %cst_21 = arith.constant dense<0.000000e+00> : vector<16xf32>
    %38 = vector.multi_reduction <add>, %35, %cst_21 [1] : vector<16x64xf32> to vector<16xf32>
    %39 = vector.shape_cast %38 : vector<16xf32> to vector<16x1xf32>
    %cst_22 = arith.constant 6.400000e+01 : f32
    %40 = vector.broadcast %cst_22 : f32 to vector<16x1xf32>
    %41 = arith.divf %39, %40 : vector<16x1xf32>
    %42 = vector.broadcast %41 : vector<16x1xf32> to vector<16x64xf32>
    %43 = arith.subf %35, %42 : vector<16x64xf32>
    %44 = arith.mulf %43, %43 : vector<16x64xf32>
    %cst_23 = arith.constant dense<0.000000e+00> : vector<16xf32>
    %45 = vector.multi_reduction <add>, %44, %cst_23 [1] : vector<16x64xf32> to vector<16xf32>
    %46 = vector.shape_cast %45 : vector<16xf32> to vector<16x1xf32>
    %cst_24 = arith.constant 6.400000e+01 : f32
    %47 = vector.broadcast %cst_24 : f32 to vector<16x1xf32>
    %48 = arith.divf %46, %47 : vector<16x1xf32>
    %cst_25 = arith.constant 9.99999996E-13 : f32
    %49 = vector.broadcast %cst_25 : f32 to vector<16x1xf32>
    %50 = arith.addf %48, %49 : vector<16x1xf32>
    %51 = math.rsqrt %50 : vector<16x1xf32>
    %52 = vector.broadcast %51 : vector<16x1xf32> to vector<16x64xf32>
    %53 = arith.mulf %43, %52 : vector<16x64xf32>
    %54 = vector.broadcast %36 : vector<1x64xf32> to vector<16x64xf32>
    %55 = arith.mulf %53, %54 : vector<16x64xf32>
    %56 = vector.broadcast %37 : vector<1x64xf32> to vector<16x64xf32>
    %57 = arith.addf %55, %56 : vector<16x64xf32>
    %c0_26 = arith.constant 0 : index
    %c0_27 = arith.constant 0 : index
    %58 = vector.load %arg3[%c0_26, %c0_27] : memref<64x64xf32, #tpu.memory_space<vmem>>, vector<64x64xf32>
    %c0_28 = arith.constant 0 : index
    %c0_29 = arith.constant 0 : index
    %59 = vector.load %arg9[%c0_28, %c0_29] : memref<64x192xbf16, #tpu.memory_space<vmem>>, vector<64x192xbf16>
    %60 = arith.truncf %57 : vector<16x64xf32> to vector<16x64xbf16>
    %cst_30 = arith.constant dense<0.000000e+00> : vector<16x192xf32>
    %61 = tpu.matmul %60, %59, %cst_30 {dimension_numbers = #tpu.dot_dimension_numbers<[1], [0], [0], [1], [0, 0, 1, 1], [], []>} : vector<16x64xbf16>, vector<64x192xbf16>, vector<16x192xf32> -> vector<16x192xf32>
    %c0_31 = arith.constant 0 : index
    %c0_32 = arith.constant 0 : index
    %62 = vector.load %arg10[%c0_31, %c0_32] : memref<1x192xf32, #tpu.memory_space<vmem>>, vector<1x192xf32>
    %63 = vector.broadcast %62 : vector<1x192xf32> to vector<16x192xf32>
    %64 = arith.addf %61, %63 : vector<16x192xf32>
    %65 = vector.extract_strided_slice %64 {offsets = [0, 0], sizes = [16, 16], strides = [1, 1]} : vector<16x192xf32> to vector<16x16xf32>
    %66 = vector.extract_strided_slice %64 {offsets = [0, 16], sizes = [16, 16], strides = [1, 1]} : vector<16x192xf32> to vector<16x16xf32>
    %67 = vector.extract_strided_slice %64 {offsets = [0, 32], sizes = [16, 16], strides = [1, 1]} : vector<16x192xf32> to vector<16x16xf32>
    %68 = vector.extract_strided_slice %64 {offsets = [0, 48], sizes = [16, 16], strides = [1, 1]} : vector<16x192xf32> to vector<16x16xf32>
    %69 = tpu.concatenate %65, %66, %67, %68 in 0 : vector<16x16xf32>, vector<16x16xf32>, vector<16x16xf32>, vector<16x16xf32> -> vector<64x16xf32>
    %70 = vector.extract_strided_slice %64 {offsets = [0, 64], sizes = [16, 16], strides = [1, 1]} : vector<16x192xf32> to vector<16x16xf32>
    %71 = vector.extract_strided_slice %64 {offsets = [0, 80], sizes = [16, 16], strides = [1, 1]} : vector<16x192xf32> to vector<16x16xf32>
    %72 = vector.extract_strided_slice %64 {offsets = [0, 96], sizes = [16, 16], strides = [1, 1]} : vector<16x192xf32> to vector<16x16xf32>
    %73 = vector.extract_strided_slice %64 {offsets = [0, 112], sizes = [16, 16], strides = [1, 1]} : vector<16x192xf32> to vector<16x16xf32>
    %74 = tpu.concatenate %70, %71, %72, %73 in 0 : vector<16x16xf32>, vector<16x16xf32>, vector<16x16xf32>, vector<16x16xf32> -> vector<64x16xf32>
    %75 = vector.extract_strided_slice %64 {offsets = [0, 128], sizes = [16, 16], strides = [1, 1]} : vector<16x192xf32> to vector<16x16xf32>
    %76 = vector.extract_strided_slice %64 {offsets = [0, 144], sizes = [16, 16], strides = [1, 1]} : vector<16x192xf32> to vector<16x16xf32>
    %77 = vector.extract_strided_slice %64 {offsets = [0, 160], sizes = [16, 16], strides = [1, 1]} : vector<16x192xf32> to vector<16x16xf32>
    %78 = vector.extract_strided_slice %64 {offsets = [0, 176], sizes = [16, 16], strides = [1, 1]} : vector<16x192xf32> to vector<16x16xf32>
    %79 = tpu.concatenate %75, %76, %77, %78 in 0 : vector<16x16xf32>, vector<16x16xf32>, vector<16x16xf32>, vector<16x16xf32> -> vector<64x16xf32>
    %80 = arith.truncf %69 : vector<64x16xf32> to vector<64x16xbf16>
    %81 = arith.truncf %74 : vector<64x16xf32> to vector<64x16xbf16>
    %cst_33 = arith.constant dense<0.000000e+00> : vector<64x64xf32>
    %82 = tpu.matmul %80, %81, %cst_33 {dimension_numbers = #tpu.dot_dimension_numbers<[1], [1], [0], [0], [0, 0, 1, 0], [], []>} : vector<64x16xbf16>, vector<64x16xbf16>, vector<64x64xf32> -> vector<64x64xf32>
    %83 = arith.addf %82, %58 : vector<64x64xf32>
    %cst_34 = arith.constant dense<0xFF800000> : vector<64xf32>
    %84 = vector.multi_reduction <maximumf>, %83, %cst_34 [1] : vector<64x64xf32> to vector<64xf32>
    %85 = vector.shape_cast %84 : vector<64xf32> to vector<64x1xf32>
    %86 = vector.broadcast %85 : vector<64x1xf32> to vector<64x64xf32>
    %87 = arith.subf %83, %86 : vector<64x64xf32>
    %88 = math.exp %87 : vector<64x64xf32>
    %cst_35 = arith.constant dense<0.000000e+00> : vector<64xf32>
    %89 = vector.multi_reduction <add>, %88, %cst_35 [1] : vector<64x64xf32> to vector<64xf32>
    %90 = vector.shape_cast %89 : vector<64xf32> to vector<64x1xf32>
    %91 = tpu.reciprocal %90 {approx = true} : vector<64x1xf32> -> vector<64x1xf32>
    %92 = vector.broadcast %91 : vector<64x1xf32> to vector<64x64xf32>
    %93 = arith.mulf %88, %92 : vector<64x64xf32>
    %94 = arith.truncf %93 : vector<64x64xf32> to vector<64x64xbf16>
    %95 = arith.truncf %79 : vector<64x16xf32> to vector<64x16xbf16>
    %cst_36 = arith.constant dense<0.000000e+00> : vector<64x16xf32>
    %96 = tpu.matmul %94, %95, %cst_36 {dimension_numbers = #tpu.dot_dimension_numbers<[1], [0], [0], [1], [0, 0, 1, 1], [], []>} : vector<64x64xbf16>, vector<64x16xbf16>, vector<64x16xf32> -> vector<64x16xf32>
    %97 = vector.extract_strided_slice %96 {offsets = [0, 0], sizes = [16, 16], strides = [1, 1]} : vector<64x16xf32> to vector<16x16xf32>
    %98 = vector.extract_strided_slice %96 {offsets = [16, 0], sizes = [16, 16], strides = [1, 1]} : vector<64x16xf32> to vector<16x16xf32>
    %99 = vector.extract_strided_slice %96 {offsets = [32, 0], sizes = [16, 16], strides = [1, 1]} : vector<64x16xf32> to vector<16x16xf32>
    %100 = vector.extract_strided_slice %96 {offsets = [48, 0], sizes = [16, 16], strides = [1, 1]} : vector<64x16xf32> to vector<16x16xf32>
    %101 = tpu.concatenate %97, %98, %99, %100 in 1 : vector<16x16xf32>, vector<16x16xf32>, vector<16x16xf32>, vector<16x16xf32> -> vector<16x64xf32>
    %c0_37 = arith.constant 0 : index
    %c0_38 = arith.constant 0 : index
    %102 = vector.load %arg11[%c0_37, %c0_38] : memref<64x64xbf16, #tpu.memory_space<vmem>>, vector<64x64xbf16>
    %103 = arith.truncf %101 : vector<16x64xf32> to vector<16x64xbf16>
    %cst_39 = arith.constant dense<0.000000e+00> : vector<16x64xf32>
    %104 = tpu.matmul %103, %102, %cst_39 {dimension_numbers = #tpu.dot_dimension_numbers<[1], [0], [0], [1], [0, 0, 1, 1], [], []>} : vector<16x64xbf16>, vector<64x64xbf16>, vector<16x64xf32> -> vector<16x64xf32>
    %c0_40 = arith.constant 0 : index
    %c0_41 = arith.constant 0 : index
    %105 = vector.load %arg12[%c0_40, %c0_41] : memref<1x64xf32, #tpu.memory_space<vmem>>, vector<1x64xf32>
    %106 = vector.broadcast %105 : vector<1x64xf32> to vector<16x64xf32>
    %107 = arith.addf %104, %106 : vector<16x64xf32>
    %108 = arith.addf %57, %107 : vector<16x64xf32>
    %c0_42 = arith.constant 0 : index
    %c0_43 = arith.constant 0 : index
    %109 = vector.load %arg13[%c0_42, %c0_43] : memref<1x64xf32, #tpu.memory_space<vmem>>, vector<1x64xf32>
    %c0_44 = arith.constant 0 : index
    %c0_45 = arith.constant 0 : index
    %110 = vector.load %arg14[%c0_44, %c0_45] : memref<1x64xf32, #tpu.memory_space<vmem>>, vector<1x64xf32>
    %cst_46 = arith.constant dense<0.000000e+00> : vector<16xf32>
    %111 = vector.multi_reduction <add>, %108, %cst_46 [1] : vector<16x64xf32> to vector<16xf32>
    %112 = vector.shape_cast %111 : vector<16xf32> to vector<16x1xf32>
    %cst_47 = arith.constant 6.400000e+01 : f32
    %113 = vector.broadcast %cst_47 : f32 to vector<16x1xf32>
    %114 = arith.divf %112, %113 : vector<16x1xf32>
    %115 = vector.broadcast %114 : vector<16x1xf32> to vector<16x64xf32>
    %116 = arith.subf %108, %115 : vector<16x64xf32>
    %117 = arith.mulf %116, %116 : vector<16x64xf32>
    %cst_48 = arith.constant dense<0.000000e+00> : vector<16xf32>
    %118 = vector.multi_reduction <add>, %117, %cst_48 [1] : vector<16x64xf32> to vector<16xf32>
    %119 = vector.shape_cast %118 : vector<16xf32> to vector<16x1xf32>
    %cst_49 = arith.constant 6.400000e+01 : f32
    %120 = vector.broadcast %cst_49 : f32 to vector<16x1xf32>
    %121 = arith.divf %119, %120 : vector<16x1xf32>
    %cst_50 = arith.constant 9.99999996E-13 : f32
    %122 = vector.broadcast %cst_50 : f32 to vector<16x1xf32>
    %123 = arith.addf %121, %122 : vector<16x1xf32>
    %124 = math.rsqrt %123 : vector<16x1xf32>
    %125 = vector.broadcast %124 : vector<16x1xf32> to vector<16x64xf32>
    %126 = arith.mulf %116, %125 : vector<16x64xf32>
    %127 = vector.broadcast %109 : vector<1x64xf32> to vector<16x64xf32>
    %128 = arith.mulf %126, %127 : vector<16x64xf32>
    %129 = vector.broadcast %110 : vector<1x64xf32> to vector<16x64xf32>
    %130 = arith.addf %128, %129 : vector<16x64xf32>
    %c0_51 = arith.constant 0 : index
    %c0_52 = arith.constant 0 : index
    %131 = vector.load %arg15[%c0_51, %c0_52] : memref<64x128xbf16, #tpu.memory_space<vmem>>, vector<64x128xbf16>
    %132 = arith.truncf %130 : vector<16x64xf32> to vector<16x64xbf16>
    %cst_53 = arith.constant dense<0.000000e+00> : vector<16x128xf32>
    %133 = tpu.matmul %132, %131, %cst_53 {dimension_numbers = #tpu.dot_dimension_numbers<[1], [0], [0], [1], [0, 0, 1, 1], [], []>} : vector<16x64xbf16>, vector<64x128xbf16>, vector<16x128xf32> -> vector<16x128xf32>
    %c0_54 = arith.constant 0 : index
    %c0_55 = arith.constant 0 : index
    %134 = vector.load %arg16[%c0_54, %c0_55] : memref<1x128xf32, #tpu.memory_space<vmem>>, vector<1x128xf32>
    %135 = vector.broadcast %134 : vector<1x128xf32> to vector<16x128xf32>
    %136 = arith.addf %133, %135 : vector<16x128xf32>
    %cst_56 = arith.constant 5.000000e-01 : f32
    %137 = vector.broadcast %cst_56 : f32 to vector<16x128xf32>
    %138 = arith.mulf %137, %136 : vector<16x128xf32>
    %cst_57 = arith.constant 0.707106769 : f32
    %139 = vector.broadcast %cst_57 : f32 to vector<16x128xf32>
    %140 = arith.mulf %136, %139 : vector<16x128xf32>
    %141 = math.erf %140 : vector<16x128xf32>
    %cst_58 = arith.constant 1.000000e+00 : f32
    %142 = vector.broadcast %cst_58 : f32 to vector<16x128xf32>
    %143 = arith.addf %142, %141 : vector<16x128xf32>
    %144 = arith.mulf %138, %143 : vector<16x128xf32>
    %c0_59 = arith.constant 0 : index
    %c0_60 = arith.constant 0 : index
    %145 = vector.load %arg17[%c0_59, %c0_60] : memref<128x64xbf16, #tpu.memory_space<vmem>>, vector<128x64xbf16>
    %146 = arith.truncf %144 : vector<16x128xf32> to vector<16x128xbf16>
    %cst_61 = arith.constant dense<0.000000e+00> : vector<16x64xf32>
    %147 = tpu.matmul %146, %145, %cst_61 {dimension_numbers = #tpu.dot_dimension_numbers<[1], [0], [0], [1], [0, 0, 1, 1], [], []>} : vector<16x128xbf16>, vector<128x64xbf16>, vector<16x64xf32> -> vector<16x64xf32>
    %c0_62 = arith.constant 0 : index
    %c0_63 = arith.constant 0 : index
    %148 = vector.load %arg18[%c0_62, %c0_63] : memref<1x64xf32, #tpu.memory_space<vmem>>, vector<1x64xf32>
    %149 = vector.broadcast %148 : vector<1x64xf32> to vector<16x64xf32>
    %150 = arith.addf %147, %149 : vector<16x64xf32>
    %151 = arith.addf %130, %150 : vector<16x64xf32>
    %c0_64 = arith.constant 0 : index
    %c0_65 = arith.constant 0 : index
    %152 = vector.load %arg19[%c0_64, %c0_65] : memref<1x64xf32, #tpu.memory_space<vmem>>, vector<1x64xf32>
    %c0_66 = arith.constant 0 : index
    %c0_67 = arith.constant 0 : index
    %153 = vector.load %arg20[%c0_66, %c0_67] : memref<1x64xf32, #tpu.memory_space<vmem>>, vector<1x64xf32>
    %cst_68 = arith.constant dense<0.000000e+00> : vector<16xf32>
    %154 = vector.multi_reduction <add>, %151, %cst_68 [1] : vector<16x64xf32> to vector<16xf32>
    %155 = vector.shape_cast %154 : vector<16xf32> to vector<16x1xf32>
    %cst_69 = arith.constant 6.400000e+01 : f32
    %156 = vector.broadcast %cst_69 : f32 to vector<16x1xf32>
    %157 = arith.divf %155, %156 : vector<16x1xf32>
    %158 = vector.broadcast %157 : vector<16x1xf32> to vector<16x64xf32>
    %159 = arith.subf %151, %158 : vector<16x64xf32>
    %160 = arith.mulf %159, %159 : vector<16x64xf32>
    %cst_70 = arith.constant dense<0.000000e+00> : vector<16xf32>
    %161 = vector.multi_reduction <add>, %160, %cst_70 [1] : vector<16x64xf32> to vector<16xf32>
    %162 = vector.shape_cast %161 : vector<16xf32> to vector<16x1xf32>
    %cst_71 = arith.constant 6.400000e+01 : f32
    %163 = vector.broadcast %cst_71 : f32 to vector<16x1xf32>
    %164 = arith.divf %162, %163 : vector<16x1xf32>
    %cst_72 = arith.constant 9.99999996E-13 : f32
    %165 = vector.broadcast %cst_72 : f32 to vector<16x1xf32>
    %166 = arith.addf %164, %165 : vector<16x1xf32>
    %167 = math.rsqrt %166 : vector<16x1xf32>
    %168 = vector.broadcast %167 : vector<16x1xf32> to vector<16x64xf32>
    %169 = arith.mulf %159, %168 : vector<16x64xf32>
    %170 = vector.broadcast %152 : vector<1x64xf32> to vector<16x64xf32>
    %171 = arith.mulf %169, %170 : vector<16x64xf32>
    %172 = vector.broadcast %153 : vector<1x64xf32> to vector<16x64xf32>
    %173 = arith.addf %171, %172 : vector<16x64xf32>
    %c0_73 = arith.constant 0 : index
    %c0_74 = arith.constant 0 : index
    %174 = vector.load %arg21[%c0_73, %c0_74] : memref<64x192xbf16, #tpu.memory_space<vmem>>, vector<64x192xbf16>
    %175 = arith.truncf %173 : vector<16x64xf32> to vector<16x64xbf16>
    %cst_75 = arith.constant dense<0.000000e+00> : vector<16x192xf32>
    %176 = tpu.matmul %175, %174, %cst_75 {dimension_numbers = #tpu.dot_dimension_numbers<[1], [0], [0], [1], [0, 0, 1, 1], [], []>} : vector<16x64xbf16>, vector<64x192xbf16>, vector<16x192xf32> -> vector<16x192xf32>
    %c0_76 = arith.constant 0 : index
    %c0_77 = arith.constant 0 : index
    %177 = vector.load %arg22[%c0_76, %c0_77] : memref<1x192xf32, #tpu.memory_space<vmem>>, vector<1x192xf32>
    %178 = vector.broadcast %177 : vector<1x192xf32> to vector<16x192xf32>
    %179 = arith.addf %176, %178 : vector<16x192xf32>
    %180 = vector.extract_strided_slice %179 {offsets = [0, 0], sizes = [16, 16], strides = [1, 1]} : vector<16x192xf32> to vector<16x16xf32>
    %181 = vector.extract_strided_slice %179 {offsets = [0, 16], sizes = [16, 16], strides = [1, 1]} : vector<16x192xf32> to vector<16x16xf32>
    %182 = vector.extract_strided_slice %179 {offsets = [0, 32], sizes = [16, 16], strides = [1, 1]} : vector<16x192xf32> to vector<16x16xf32>
    %183 = vector.extract_strided_slice %179 {offsets = [0, 48], sizes = [16, 16], strides = [1, 1]} : vector<16x192xf32> to vector<16x16xf32>
    %184 = tpu.concatenate %180, %181, %182, %183 in 0 : vector<16x16xf32>, vector<16x16xf32>, vector<16x16xf32>, vector<16x16xf32> -> vector<64x16xf32>
    %185 = vector.extract_strided_slice %179 {offsets = [0, 64], sizes = [16, 16], strides = [1, 1]} : vector<16x192xf32> to vector<16x16xf32>
    %186 = vector.extract_strided_slice %179 {offsets = [0, 80], sizes = [16, 16], strides = [1, 1]} : vector<16x192xf32> to vector<16x16xf32>
    %187 = vector.extract_strided_slice %179 {offsets = [0, 96], sizes = [16, 16], strides = [1, 1]} : vector<16x192xf32> to vector<16x16xf32>
    %188 = vector.extract_strided_slice %179 {offsets = [0, 112], sizes = [16, 16], strides = [1, 1]} : vector<16x192xf32> to vector<16x16xf32>
    %189 = tpu.concatenate %185, %186, %187, %188 in 0 : vector<16x16xf32>, vector<16x16xf32>, vector<16x16xf32>, vector<16x16xf32> -> vector<64x16xf32>
    %190 = vector.extract_strided_slice %179 {offsets = [0, 128], sizes = [16, 16], strides = [1, 1]} : vector<16x192xf32> to vector<16x16xf32>
    %191 = vector.extract_strided_slice %179 {offsets = [0, 144], sizes = [16, 16], strides = [1, 1]} : vector<16x192xf32> to vector<16x16xf32>
    %192 = vector.extract_strided_slice %179 {offsets = [0, 160], sizes = [16, 16], strides = [1, 1]} : vector<16x192xf32> to vector<16x16xf32>
    %193 = vector.extract_strided_slice %179 {offsets = [0, 176], sizes = [16, 16], strides = [1, 1]} : vector<16x192xf32> to vector<16x16xf32>
    %194 = tpu.concatenate %190, %191, %192, %193 in 0 : vector<16x16xf32>, vector<16x16xf32>, vector<16x16xf32>, vector<16x16xf32> -> vector<64x16xf32>
    %195 = arith.truncf %184 : vector<64x16xf32> to vector<64x16xbf16>
    %196 = arith.truncf %189 : vector<64x16xf32> to vector<64x16xbf16>
    %cst_78 = arith.constant dense<0.000000e+00> : vector<64x64xf32>
    %197 = tpu.matmul %195, %196, %cst_78 {dimension_numbers = #tpu.dot_dimension_numbers<[1], [1], [0], [0], [0, 0, 1, 0], [], []>} : vector<64x16xbf16>, vector<64x16xbf16>, vector<64x64xf32> -> vector<64x64xf32>
    %198 = arith.addf %197, %58 : vector<64x64xf32>
    %cst_79 = arith.constant dense<0xFF800000> : vector<64xf32>
    %199 = vector.multi_reduction <maximumf>, %198, %cst_79 [1] : vector<64x64xf32> to vector<64xf32>
    %200 = vector.shape_cast %199 : vector<64xf32> to vector<64x1xf32>
    %201 = vector.broadcast %200 : vector<64x1xf32> to vector<64x64xf32>
    %202 = arith.subf %198, %201 : vector<64x64xf32>
    %203 = math.exp %202 : vector<64x64xf32>
    %cst_80 = arith.constant dense<0.000000e+00> : vector<64xf32>
    %204 = vector.multi_reduction <add>, %203, %cst_80 [1] : vector<64x64xf32> to vector<64xf32>
    %205 = vector.shape_cast %204 : vector<64xf32> to vector<64x1xf32>
    %206 = tpu.reciprocal %205 {approx = true} : vector<64x1xf32> -> vector<64x1xf32>
    %207 = vector.broadcast %206 : vector<64x1xf32> to vector<64x64xf32>
    %208 = arith.mulf %203, %207 : vector<64x64xf32>
    %209 = arith.truncf %208 : vector<64x64xf32> to vector<64x64xbf16>
    %210 = arith.truncf %194 : vector<64x16xf32> to vector<64x16xbf16>
    %cst_81 = arith.constant dense<0.000000e+00> : vector<64x16xf32>
    %211 = tpu.matmul %209, %210, %cst_81 {dimension_numbers = #tpu.dot_dimension_numbers<[1], [0], [0], [1], [0, 0, 1, 1], [], []>} : vector<64x64xbf16>, vector<64x16xbf16>, vector<64x16xf32> -> vector<64x16xf32>
    %212 = vector.extract_strided_slice %211 {offsets = [0, 0], sizes = [16, 16], strides = [1, 1]} : vector<64x16xf32> to vector<16x16xf32>
    %213 = vector.extract_strided_slice %211 {offsets = [16, 0], sizes = [16, 16], strides = [1, 1]} : vector<64x16xf32> to vector<16x16xf32>
    %214 = vector.extract_strided_slice %211 {offsets = [32, 0], sizes = [16, 16], strides = [1, 1]} : vector<64x16xf32> to vector<16x16xf32>
    %215 = vector.extract_strided_slice %211 {offsets = [48, 0], sizes = [16, 16], strides = [1, 1]} : vector<64x16xf32> to vector<16x16xf32>
    %216 = tpu.concatenate %212, %213, %214, %215 in 1 : vector<16x16xf32>, vector<16x16xf32>, vector<16x16xf32>, vector<16x16xf32> -> vector<16x64xf32>
    %c0_82 = arith.constant 0 : index
    %c0_83 = arith.constant 0 : index
    %217 = vector.load %arg23[%c0_82, %c0_83] : memref<64x64xbf16, #tpu.memory_space<vmem>>, vector<64x64xbf16>
    %218 = arith.truncf %216 : vector<16x64xf32> to vector<16x64xbf16>
    %cst_84 = arith.constant dense<0.000000e+00> : vector<16x64xf32>
    %219 = tpu.matmul %218, %217, %cst_84 {dimension_numbers = #tpu.dot_dimension_numbers<[1], [0], [0], [1], [0, 0, 1, 1], [], []>} : vector<16x64xbf16>, vector<64x64xbf16>, vector<16x64xf32> -> vector<16x64xf32>
    %c0_85 = arith.constant 0 : index
    %c0_86 = arith.constant 0 : index
    %220 = vector.load %arg24[%c0_85, %c0_86] : memref<1x64xf32, #tpu.memory_space<vmem>>, vector<1x64xf32>
    %221 = vector.broadcast %220 : vector<1x64xf32> to vector<16x64xf32>
    %222 = arith.addf %219, %221 : vector<16x64xf32>
    %223 = arith.addf %173, %222 : vector<16x64xf32>
    %c0_87 = arith.constant 0 : index
    %c0_88 = arith.constant 0 : index
    %224 = vector.load %arg25[%c0_87, %c0_88] : memref<1x64xf32, #tpu.memory_space<vmem>>, vector<1x64xf32>
    %c0_89 = arith.constant 0 : index
    %c0_90 = arith.constant 0 : index
    %225 = vector.load %arg26[%c0_89, %c0_90] : memref<1x64xf32, #tpu.memory_space<vmem>>, vector<1x64xf32>
    %cst_91 = arith.constant dense<0.000000e+00> : vector<16xf32>
    %226 = vector.multi_reduction <add>, %223, %cst_91 [1] : vector<16x64xf32> to vector<16xf32>
    %227 = vector.shape_cast %226 : vector<16xf32> to vector<16x1xf32>
    %cst_92 = arith.constant 6.400000e+01 : f32
    %228 = vector.broadcast %cst_92 : f32 to vector<16x1xf32>
    %229 = arith.divf %227, %228 : vector<16x1xf32>
    %230 = vector.broadcast %229 : vector<16x1xf32> to vector<16x64xf32>
    %231 = arith.subf %223, %230 : vector<16x64xf32>
    %232 = arith.mulf %231, %231 : vector<16x64xf32>
    %cst_93 = arith.constant dense<0.000000e+00> : vector<16xf32>
    %233 = vector.multi_reduction <add>, %232, %cst_93 [1] : vector<16x64xf32> to vector<16xf32>
    %234 = vector.shape_cast %233 : vector<16xf32> to vector<16x1xf32>
    %cst_94 = arith.constant 6.400000e+01 : f32
    %235 = vector.broadcast %cst_94 : f32 to vector<16x1xf32>
    %236 = arith.divf %234, %235 : vector<16x1xf32>
    %cst_95 = arith.constant 9.99999996E-13 : f32
    %237 = vector.broadcast %cst_95 : f32 to vector<16x1xf32>
    %238 = arith.addf %236, %237 : vector<16x1xf32>
    %239 = math.rsqrt %238 : vector<16x1xf32>
    %240 = vector.broadcast %239 : vector<16x1xf32> to vector<16x64xf32>
    %241 = arith.mulf %231, %240 : vector<16x64xf32>
    %242 = vector.broadcast %224 : vector<1x64xf32> to vector<16x64xf32>
    %243 = arith.mulf %241, %242 : vector<16x64xf32>
    %244 = vector.broadcast %225 : vector<1x64xf32> to vector<16x64xf32>
    %245 = arith.addf %243, %244 : vector<16x64xf32>
    %c0_96 = arith.constant 0 : index
    %c0_97 = arith.constant 0 : index
    %246 = vector.load %arg27[%c0_96, %c0_97] : memref<64x128xbf16, #tpu.memory_space<vmem>>, vector<64x128xbf16>
    %247 = arith.truncf %245 : vector<16x64xf32> to vector<16x64xbf16>
    %cst_98 = arith.constant dense<0.000000e+00> : vector<16x128xf32>
    %248 = tpu.matmul %247, %246, %cst_98 {dimension_numbers = #tpu.dot_dimension_numbers<[1], [0], [0], [1], [0, 0, 1, 1], [], []>} : vector<16x64xbf16>, vector<64x128xbf16>, vector<16x128xf32> -> vector<16x128xf32>
    %c0_99 = arith.constant 0 : index
    %c0_100 = arith.constant 0 : index
    %249 = vector.load %arg28[%c0_99, %c0_100] : memref<1x128xf32, #tpu.memory_space<vmem>>, vector<1x128xf32>
    %250 = vector.broadcast %249 : vector<1x128xf32> to vector<16x128xf32>
    %251 = arith.addf %248, %250 : vector<16x128xf32>
    %cst_101 = arith.constant 5.000000e-01 : f32
    %252 = vector.broadcast %cst_101 : f32 to vector<16x128xf32>
    %253 = arith.mulf %252, %251 : vector<16x128xf32>
    %cst_102 = arith.constant 0.707106769 : f32
    %254 = vector.broadcast %cst_102 : f32 to vector<16x128xf32>
    %255 = arith.mulf %251, %254 : vector<16x128xf32>
    %256 = math.erf %255 : vector<16x128xf32>
    %cst_103 = arith.constant 1.000000e+00 : f32
    %257 = vector.broadcast %cst_103 : f32 to vector<16x128xf32>
    %258 = arith.addf %257, %256 : vector<16x128xf32>
    %259 = arith.mulf %253, %258 : vector<16x128xf32>
    %c0_104 = arith.constant 0 : index
    %c0_105 = arith.constant 0 : index
    %260 = vector.load %arg29[%c0_104, %c0_105] : memref<128x64xbf16, #tpu.memory_space<vmem>>, vector<128x64xbf16>
    %261 = arith.truncf %259 : vector<16x128xf32> to vector<16x128xbf16>
    %cst_106 = arith.constant dense<0.000000e+00> : vector<16x64xf32>
    %262 = tpu.matmul %261, %260, %cst_106 {dimension_numbers = #tpu.dot_dimension_numbers<[1], [0], [0], [1], [0, 0, 1, 1], [], []>} : vector<16x128xbf16>, vector<128x64xbf16>, vector<16x64xf32> -> vector<16x64xf32>
    %c0_107 = arith.constant 0 : index
    %c0_108 = arith.constant 0 : index
    %263 = vector.load %arg30[%c0_107, %c0_108] : memref<1x64xf32, #tpu.memory_space<vmem>>, vector<1x64xf32>
    %264 = vector.broadcast %263 : vector<1x64xf32> to vector<16x64xf32>
    %265 = arith.addf %262, %264 : vector<16x64xf32>
    %266 = arith.addf %245, %265 : vector<16x64xf32>
    %c0_109 = arith.constant 0 : index
    %c0_110 = arith.constant 0 : index
    %267 = vector.load %arg31[%c0_109, %c0_110] : memref<1x64xf32, #tpu.memory_space<vmem>>, vector<1x64xf32>
    %c0_111 = arith.constant 0 : index
    %c0_112 = arith.constant 0 : index
    %268 = vector.load %arg32[%c0_111, %c0_112] : memref<1x64xf32, #tpu.memory_space<vmem>>, vector<1x64xf32>
    %cst_113 = arith.constant dense<0.000000e+00> : vector<16xf32>
    %269 = vector.multi_reduction <add>, %266, %cst_113 [1] : vector<16x64xf32> to vector<16xf32>
    %270 = vector.shape_cast %269 : vector<16xf32> to vector<16x1xf32>
    %cst_114 = arith.constant 6.400000e+01 : f32
    %271 = vector.broadcast %cst_114 : f32 to vector<16x1xf32>
    %272 = arith.divf %270, %271 : vector<16x1xf32>
    %273 = vector.broadcast %272 : vector<16x1xf32> to vector<16x64xf32>
    %274 = arith.subf %266, %273 : vector<16x64xf32>
    %275 = arith.mulf %274, %274 : vector<16x64xf32>
    %cst_115 = arith.constant dense<0.000000e+00> : vector<16xf32>
    %276 = vector.multi_reduction <add>, %275, %cst_115 [1] : vector<16x64xf32> to vector<16xf32>
    %277 = vector.shape_cast %276 : vector<16xf32> to vector<16x1xf32>
    %cst_116 = arith.constant 6.400000e+01 : f32
    %278 = vector.broadcast %cst_116 : f32 to vector<16x1xf32>
    %279 = arith.divf %277, %278 : vector<16x1xf32>
    %cst_117 = arith.constant 9.99999996E-13 : f32
    %280 = vector.broadcast %cst_117 : f32 to vector<16x1xf32>
    %281 = arith.addf %279, %280 : vector<16x1xf32>
    %282 = math.rsqrt %281 : vector<16x1xf32>
    %283 = vector.broadcast %282 : vector<16x1xf32> to vector<16x64xf32>
    %284 = arith.mulf %274, %283 : vector<16x64xf32>
    %285 = vector.broadcast %267 : vector<1x64xf32> to vector<16x64xf32>
    %286 = arith.mulf %284, %285 : vector<16x64xf32>
    %287 = vector.broadcast %268 : vector<1x64xf32> to vector<16x64xf32>
    %288 = arith.addf %286, %287 : vector<16x64xf32>
    %289 = vector.extract_strided_slice %288 {offsets = [0, 0], sizes = [1, 64], strides = [1, 1]} : vector<16x64xf32> to vector<1x64xf32>
    %290 = vector.extract_strided_slice %288 {offsets = [8, 0], sizes = [1, 64], strides = [1, 1]} : vector<16x64xf32> to vector<1x64xf32>
    %291 = tpu.concatenate %289, %290 in 0 : vector<1x64xf32>, vector<1x64xf32> -> vector<2x64xf32>
    %c0_118 = arith.constant 0 : index
    %c0_119 = arith.constant 0 : index
    %292 = vector.load %arg33[%c0_118, %c0_119] : memref<64x64xbf16, #tpu.memory_space<vmem>>, vector<64x64xbf16>
    %293 = arith.truncf %291 : vector<2x64xf32> to vector<2x64xbf16>
    %cst_120 = arith.constant dense<0.000000e+00> : vector<2x64xf32>
    %294 = tpu.matmul %293, %292, %cst_120 {dimension_numbers = #tpu.dot_dimension_numbers<[1], [0], [0], [1], [0, 0, 1, 1], [], []>} : vector<2x64xbf16>, vector<64x64xbf16>, vector<2x64xf32> -> vector<2x64xf32>
    %c0_121 = arith.constant 0 : index
    %c0_122 = arith.constant 0 : index
    %295 = vector.load %arg34[%c0_121, %c0_122] : memref<1x64xf32, #tpu.memory_space<vmem>>, vector<1x64xf32>
    %296 = vector.broadcast %295 : vector<1x64xf32> to vector<2x64xf32>
    %297 = arith.addf %294, %296 : vector<2x64xf32>
    %298 = math.tanh %297 : vector<2x64xf32>
    %c0_123 = arith.constant 0 : index
    %c0_124 = arith.constant 0 : index
    %299 = vector.load %arg35[%c0_123, %c0_124] : memref<64x3xbf16, #tpu.memory_space<vmem>>, vector<64x3xbf16>
    %300 = arith.truncf %298 : vector<2x64xf32> to vector<2x64xbf16>
    %cst_125 = arith.constant dense<0.000000e+00> : vector<2x3xf32>
    %301 = tpu.matmul %300, %299, %cst_125 {dimension_numbers = #tpu.dot_dimension_numbers<[1], [0], [0], [1], [0, 0, 1, 1], [], []>} : vector<2x64xbf16>, vector<64x3xbf16>, vector<2x3xf32> -> vector<2x3xf32>
    %c0_126 = arith.constant 0 : index
    %c0_127 = arith.constant 0 : index
    %302 = vector.load %arg36[%c0_126, %c0_127] : memref<1x3xf32, #tpu.memory_space<vmem>>, vector<1x3xf32>
    %303 = vector.broadcast %302 : vector<1x3xf32> to vector<2x3xf32>
    %304 = arith.addf %301, %303 : vector<2x3xf32>
    %c0_128 = arith.constant 0 : index
    %c0_129 = arith.constant 0 : index
    %305 = vector.load %arg37[%c0_128, %c0_129] : memref<2x3xf32, #tpu.memory_space<vmem>>, vector<2x3xf32>
    tpu.vector_store %arg37[%c0_128, %c0_129], %304 {strides = array<i32>} : memref<2x3xf32, #tpu.memory_space<vmem>>, vector<2x3xf32>,
    return
  }
}

</mosaic_0001>

<bundles_post_ra>
// kernel: tile.0
= control target key start
LH: loop header
LB: loop body
LE: loop exit
PB: predicated region body
PF: predicated region fallthrough
CT: control target
= control target key end

     0   :  { %s66_s8 = smov 125   ;;  %vm7_vm0 = vcmask 7168   ;;  %s67_s11 = smov 126   ;;  %s117_s0 = inlined_call_operand.vmem [shape: s32[2,8], index: 0, kind: input, shape index: {}]   ;;  %s118_s1 = inlined_call_operand.vmem [shape: s32[16,1], index: 1, kind: output, shape index: {}]  }
   0x1   :  { %v4_v0 = vld [vmem:[%s117_s0] sm:$0x3]  ;;  %s65_s0 = smov 127   ;;  %s68_s12 = smov 124  }
   0x2   :  { %5 = vst [vmem:[#allocation0] sm:$0x3] %v4_v0  ;;  %s69_s13 = smov 123   ;;  %s70_s14 = smov 122  }
   0x3   :  { %s71_s15 = smov 121  }
   0x9   :  { %v9_v1 = vld [vmem:[#allocation0] sm:$0x3]  }
   0xa   :  { %v21_v2 = vld [vmem:[#allocation0] sm:$0x3]   ;;  %10 = vrot.lane.b32.xlu0 %v9_v1, %s65_s0 }
   0xb   :  { %22 = vrot.lane.b32.xlu1 %v21_v2, %s66_s8  ;;  %v15_v3 = vld [vmem:[#allocation0] sm:$0x3]  }
   0xc   :  { %v27_v4 = vld [vmem:[#allocation0] sm:$0x3]  }
   0xd   :  { %v6_v5 = vld [vmem:[#allocation0] sm:$0x3]  }
   0xe   :  { %8 = vst.msk [vmem:[%s118_s1] ss:$8 sm:$0x3] %vm7_vm0, %v6_v5   ;;  %16 = vrot.lane.b32.xlu0 %v15_v3, %s67_s11  ;;  %v33_v6 = vld [vmem:[#allocation0] sm:$0x3]  }
   0xf   :  { %28 = vrot.lane.b32.xlu1 %v27_v4, %s68_s12  ;;  %v39_v7 = vld [vmem:[#allocation0] sm:$0x3]  }
  0x10   :  { %v45_v8 = vld [vmem:[#allocation0] sm:$0x3]  }
  0x12   :  { %34 = vrot.lane.b32.xlu0 %v33_v6, %s69_s13 }
  0x13   :  { %40 = vrot.lane.b32.xlu1 %v39_v7, %s70_s14 }
  0x16   :  { %46 = vrot.lane.b32.xlu0 %v45_v8, %s71_s15 }
  0x7c   :  { %v11_v9 = vpop.permute.xlu0 %10  }
  0x7d   :  { %v23_v10 = vpop.permute.xlu1 %22   ;;  %51 = vst.msk [vmem:[%s118_s1 + $0x1] ss:$8 sm:$0x3] %vm7_vm0, %v11_v9  }
  0x7e   :  { %53 = vst.msk [vmem:[%s118_s1 + $0x3] ss:$8 sm:$0x3] %vm7_vm0, %v23_v10  }
  0x80   :  { %v17_v11 = vpop.permute.xlu0 %16  }
  0x81   :  { %v29_v12 = vpop.permute.xlu1 %28   ;;  %52 = vst.msk [vmem:[%s118_s1 + $0x2] ss:$8 sm:$0x3] %vm7_vm0, %v17_v11  }
  0x82   :  { %54 = vst.msk [vmem:[%s118_s1 + $0x4] ss:$8 sm:$0x3] %vm7_vm0, %v29_v12  }
  0x84   :  { %v35_v13 = vpop.permute.xlu0 %34  }
  0x85   :  { %v41_v14 = vpop.permute.xlu1 %40   ;;  %55 = vst.msk [vmem:[%s118_s1 + $0x5] ss:$8 sm:$0x3] %vm7_vm0, %v35_v13  }
  0x86   :  { %56 = vst.msk [vmem:[%s118_s1 + $0x6] ss:$8 sm:$0x3] %vm7_vm0, %v41_v14  }
  0x88   :  { %v47_v15 = vpop.permute.xlu0 %46  }
  0x89   :  { %57 = vst.msk [vmem:[%s118_s1 + $0x7] ss:$8 sm:$0x3] %vm7_vm0, %v47_v15  }

// kernel: bert_forward.1
= control target key start
LH: loop header
LB: loop body
LE: loop exit
PB: predicated region body
PF: predicated region fallthrough
CT: control target
= control target key end

     0   :  { %s3059_s6 = smov 1   ;;  %s3060_s10 = smov 2   ;;  %s3706_s0 = inlined_call_operand.smem [shape: u32[38], index: -1, kind: input, shape index: {}] }
   0x1   :  { %s3115_s5 = sld [smem:[%s3706_s0]]   ;;  %s3061_s14 = smov 3  }
   0x2   :  { %s3120_s9 = sld [smem:[%s3706_s0 + %s3059_s6]]   ;;  %s3062_s18 = smov 4  }
   0x3   :  { %s3125_s13 = sld [smem:[%s3706_s0 + %s3060_s10]]   ;;  %s3063_s22 = smov 5  }
   0x4   :  { %s3130_s17 = sld [smem:[%s3706_s0 + %s3061_s14]]   ;;  %s3064_s26 = smov 6  }
   0x5   :  { %s3135_s21 = sld [smem:[%s3706_s0 + %s3062_s18]]   ;;  %s3065_s30 = smov 7  }
   0x6   :  { %s3140_s25 = sld [smem:[%s3706_s0 + %s3063_s22]]   ;;  %s3066_s4 = smov 8  }
   0x7   :  { %s3145_s29 = sld [smem:[%s3706_s0 + %s3064_s26]]   ;;  %s3067_s10 = smov 9  }
   0x8   :  { %s3150_s3 = sld [smem:[%s3706_s0 + %s3065_s30]]   ;;  %s3068_s15 = smov 10  }
   0x9   :  { %s3155_s8 = sld [smem:[%s3706_s0 + %s3066_s4]]   ;;  %s3069_s20 = smov 11  }
   0xa   :  { %s3160_s14 = sld [smem:[%s3706_s0 + %s3067_s10]]   ;;  %s3070_s26 = smov 12  }
   0xb   :  { %s3165_s19 = sld [smem:[%s3706_s0 + %s3068_s15]]   ;;  %s3071_s1 = smov 13  }
   0xc   :  { %s3170_s24 = sld [smem:[%s3706_s0 + %s3069_s20]]   ;;  %s3072_s7 = smov 14  }
   0xd   :  { %s3175_s30 = sld [smem:[%s3706_s0 + %s3070_s26]]   ;;  %s3073_s15 = smov 15  }
   0xe   :  { %s3180_s6 = sld [smem:[%s3706_s0 + %s3071_s1]]   ;;  %s3074_s22 = smov 16  }
   0xf   :  { %s3185_s12 = sld [smem:[%s3706_s0 + %s3072_s7]]   ;;  %s3075_s28 = smov 17  }
  0x10   :  { %s3190_s20 = sld [smem:[%s3706_s0 + %s3073_s15]]   ;;  %s3076_s7 = smov 18  }
  0x11   :  { %s3195_s27 = sld [smem:[%s3706_s0 + %s3074_s22]]   ;;  %s3077_s15 = smov 19  }
  0x12   :  { %s3200_s4 = sld [smem:[%s3706_s0 + %s3075_s28]]   ;;  %s3078_s22 = smov 20  }
  0x13   :  { %s3079_s28 = smov 21  }
  0x14   :  { %3713 = sst [smem:[#allocation5_spill]] %s3180_s6 }
  0x15   :  { %3714 = sst [smem:[#allocation6_spill]] %s3185_s12 }
  0x16   :  { %s3205_s12 = sld [smem:[%s3706_s0 + %s3076_s7]]   ;;  %s3080_s7 = smov 22  }
  0x17   :  { %3715 = sst [smem:[#allocation7_spill]] %s3195_s27 }
  0x18   :  { %3716 = sst [smem:[#allocation8_spill]] %s3200_s4 }
  0x19   :  { %s3210_s6 = sld [smem:[%s3706_s0 + %s3077_s15]]   ;;  %s3081_s15 = smov 23  }
  0x1a   :  { %s3215_s27 = sld [smem:[%s3706_s0 + %s3078_s22]]   ;;  %s3082_s22 = smov 24  }
  0x1b   :  { %s3220_s4 = sld [smem:[%s3706_s0 + %s3079_s28]]   ;;  %s3083_s28 = smov 25  }
  0x1c   :  { %3717 = sst [smem:[#allocation9_spill]] %s3205_s12 }
  0x1d   :  { %s3225_s12 = sld [smem:[%s3706_s0 + %s3080_s7]]   ;;  %s3084_s7 = smov 26  }
  0x1f   :  { %3718 = sst [smem:[#allocation10_spill]] %s3210_s6 }
  0x20   :  { %3719 = sst [smem:[#allocation11_spill]] %s3215_s27 }
  0x21   :  { %3720 = sst [smem:[#allocation12_spill]] %s3220_s4 }
  0x22   :  { %s3230_s6 = sld [smem:[%s3706_s0 + %s3081_s15]]   ;;  %s3085_s15 = smov 27  }
  0x23   :  { %3721 = sst [smem:[#allocation13_spill]] %s3225_s12 }
  0x24   :  { %s3235_s27 = sld [smem:[%s3706_s0 + %s3082_s22]]   ;;  %s3086_s22 = smov 28  }
  0x25   :  { %s3240_s4 = sld [smem:[%s3706_s0 + %s3083_s28]]   ;;  %s3087_s28 = smov 29  }
  0x26   :  { %s3245_s12 = sld [smem:[%s3706_s0 + %s3084_s7]]   ;;  %s3088_s7 = smov 30  }
  0x28   :  { %3722 = sst [smem:[#allocation14_spill]] %s3230_s6 }
  0x29   :  { %s3250_s6 = sld [smem:[%s3706_s0 + %s3085_s15]]   ;;  %s3089_s15 = smov 31  }
  0x2a   :  { %3723 = sst [smem:[#allocation15_spill]] %s3235_s27 }
  0x2b   :  { %3724 = sst [smem:[#allocation16_spill]] %s3240_s4 }
  0x2c   :  { %3725 = sst [smem:[#allocation17_spill]] %s3245_s12 }
  0x2d   :  { %s3255_s27 = sld [smem:[%s3706_s0 + %s3086_s22]]   ;;  %s3090_s22 = smov 32  }
  0x2e   :  { %s3260_s4 = sld [smem:[%s3706_s0 + %s3087_s28]]   ;;  %s3091_s28 = smov 33  }
  0x2f   :  { %3726 = sst [smem:[#allocation18_spill]] %s3250_s6 }
  0x30   :  { %s3265_s12 = sld [smem:[%s3706_s0 + %s3088_s7]]   ;;  %s3092_s7 = smov 34  }
  0x31   :  { %s3270_s6 = sld [smem:[%s3706_s0 + %s3089_s15]]   ;;  %s3093_s15 = smov 35  }
  0x33   :  { %3727 = sst [smem:[#allocation19_spill]] %s3255_s27 }
  0x34   :  { %3728 = sst [smem:[#allocation20_spill]] %s3260_s4 }
  0x35   :  { %s3275_s27 = sld [smem:[%s3706_s0 + %s3090_s22]]   ;;  %s3094_s22 = smov 36  }
  0x36   :  { %3729 = sst [smem:[#allocation21_spill]] %s3265_s12 }
  0x37   :  { %3730 = sst [smem:[#allocation22_spill]] %s3270_s6 }
  0x38   :  { %s3280_s4 = sld [smem:[%s3706_s0 + %s3091_s28]]   ;;  %s3095_s28 = smov 37  }
  0x39   :  { %s3285_s12 = sld [smem:[%s3706_s0 + %s3092_s7]]  }
  0x3a   :  { %s3290_s6 = sld [smem:[%s3706_s0 + %s3093_s15]]  }
  0x3b   :  { %3731 = sst [smem:[#allocation23_spill]] %s3275_s27 }
  0x3c   :  { %s3295_s27 = sld [smem:[%s3706_s0 + %s3094_s22]]  }
  0x3e   :  { %3732 = sst [smem:[#allocation24_spill]] %s3280_s4 }
  0x3f   :  { %s3300_s4 = sld [smem:[%s3706_s0 + %s3095_s28]]  }
  0x40   :  { %v184_v0 = vld [vmem:[%s3120_s9] sm:$0xff]  ;;  %v3096_v2 = vmov 0   ;;  %v251_v4 = vld [vmem:[%s3125_s13 + $0x8] sm:$0xff]  ;;  %v3097_v7 = vmov 0.0   ;;  %vm3098_vm2 = vmmov 0  }
  0x41   :  { %v250_v1 = vld [vmem:[%s3125_s13] sm:$0xff]  ;;  %2777 = vset.pattern.permute.xlu0 %v3096_v2  ;;  %2778 = vset.pattern.permute.xlu1 %v3096_v2  ;;  %v185_v5 = vld [vmem:[%s3120_s9 + $0x8] sm:$0xff]  ;;  %vm253_vm1 = vcmp.eq.s32.totalorder %v251_v4, 0 }
  0x42   :  { %v156_v3 = vld [vmem:[%s3115_s5] sm:$0xff]  ;;  %187 = vperm.xlu0 %2777, %v184_v0   ;;  %vm252_vm0 = vcmp.eq.s32.totalorder %v250_v1, 0  ;;  %v157_v6 = vld [vmem:[%s3115_s5 + $0x8] sm:$0xff]  ;;  %2521 = vmatprep.subr.bf16.mxu1 %v3097_v7  ;;  %v257_v10 = vsel %vm253_vm1, 1, %v3096_v2 }
  0x43   :  { %161 = vperm.xlu1 %2778, %v156_v3   ;;  %516 = vmatprep.mubr.bf16.mxu0 %v3096_v2  ;;  %v2869_v8 = vld [vmem:[%s3140_s25] sm:$0xff]   ;;  %v256_v9 = vsel %vm252_vm0, 1, %v3096_v2 }
  0x44   :  { %2522 = vmatpush3.bf16.msra.mxu1 %v2869_v8  ;;  %2523 = vmatprep.mubr.msk.bf16.mxu1 %vm3098_vm2, %v3097_v7 }
  0x45   :  { %2527 = vmatprep.subr.bf16.mxu1 %v3097_v7 }
  0x46   :  { %190 = vperm.xlu0 %2777, %v185_v5  }
  0x47   :  { %164 = vperm.xlu1 %2778, %v157_v6  }
  0x4a   :  { %259 = vperm.xlu0 %2777, %v256_v9  }
  0x4b   :  { %262 = vperm.xlu1 %2778, %v257_v10  }
  0x4c   :  { %80 = vsyncpa [#allocation3], 0  ;;  %v158_v11 = vlaneseq  ;;  %vm205_vm5 = vcmask 130048   ;;  %v2870_v17 = vld [vmem:[%s3135_s21] sm:$0xff]   ;;  %v2871_v19 = vld [vmem:[%s3135_s21 + $0x8] sm:$0xff]   ;;  %vm319_vm6 = vcmask 1041408  }
  0x4d   :  { %v2872_v20 = vld [vmem:[%s3135_s21 + $0x10] sm:$0xff]   ;;  %v2873_v21 = vld [vmem:[%s3135_s21 + $0x18] sm:$0xff]   ;;  %v2874_v23 = vld [vmem:[%s3135_s21 + $0x20] sm:$0xff]   ;;  %vm315_vm9 = vcmask 818176   ;;  %vm368_vm12 = vcmask 523264   ;;  %s3099_s0 = smov 96  }
  0x4e   :  { %v159_v12 = vand.u32 127, %v158_v11  ;;  %v2875_v24 = vld [vmem:[%s3135_s21 + $0x28] sm:$0xff]   ;;  %v2876_v25 = vld [vmem:[%s3135_s21 + $0x30] ss:$0 sps:$4 sm:$0x33]   ;;  %v267_v35 = vshrl.u32 %v158_v11, 7 }
  0x4f   :  { %v321_v27 = vsel %vm319_vm6, %v2876_v25, 0  ;;  %v254_v36 = vld [vmem:[%s3145_s29] sm:$0x1]  ;;  %v2877_v3 = vld [vmem:[%s3160_s14 + $0x4] ss:$8 sps:$4 sm:$0xff]   ;;  %s3100_s5 = smov 112  }
  0x50   :  { %v255_v37 = vunpack.c.l.bf16 %v254_v36  ;;  %v3339_v38 = vsub.s32 0, %v267_v35  ;;  %v3341_v39 = vsub.s32 1, %v267_v35  ;;  %v2879_v4 = vld [vmem:[%s3160_s14] ss:$8 sps:$4 sm:$0xff]   ;;  %484 = vmatprep.subr.bf16.mxu0 %v2877_v3  ;;  %v2880_v5 = vld [vmem:[%s3160_s14 + $0x14] ss:$8 sps:$4 sm:$0xff]  }
  0x51   :  { %485 = vmatpush1.bf16.msra.mxu0 %v2879_v4  ;;  %v2882_v6 = vld [vmem:[%s3160_s14 + $0x10] ss:$8 sps:$4 sm:$0xff]   ;;  %v2883_v8 = vld [vmem:[%s3160_s14 + $0x24] ss:$8 sps:$4 sm:$0xff]   ;;  %v2885_v9 = vld [vmem:[%s3160_s14 + $0x20] ss:$8 sps:$4 sm:$0xff]  }
  0x52   :  { %v269_v41 = vrot.slane %v255_v37, %v3339_v38  ;;  %v273_v42 = vrot.slane %v255_v37, %v3341_v39  ;;  %486 = vmatprep.subr.bf16.mxu0 %v2880_v5  ;;  %v2886_v10 = vld [vmem:[%s3160_s14 + $0x34] ss:$8 sps:$4 sm:$0xff]   ;;  %v2888_v11 = vld [vmem:[%s3160_s14 + $0x30] ss:$8 sps:$4 sm:$0xff]   ;;  %s3101_s9 = smov 80   ;;  %s3102_s13 = smov 64  }
  0x53   :  { %v3394_v3 = vld [vmem:[%s3130_s17] sm:$0xff]  ;;  %s3104_s21 = smov 48   ;;  %s3105_s25 = smov 32   ;;  %vm871_vm13 = vcmask 261120   ;;  %vm874_vm14 = vcmask 392192   ;;  %vm2101_vm15 = vcmask 1040384  }
  0x54   :  { %s3733_s29 = sld [smem:[#allocation8_spill]]  ;;  %s3736_s14 = sld [smem:[#allocation7_spill]]  ;;  %vm2270_vm0 = vcmask 17408  }
  0x55   :  { %487 = vmatpush1.bf16.msra.mxu0 %v2882_v6  ;;  %v3397_v6 = vld [vmem:[%s3130_s17 + $0x18] sm:$0xff]  ;;  %s3741_s7 = sld [smem:[#allocation13_spill]]  ;;  %s3742_s10 = sld [smem:[#allocation14_spill]] }
  0x56   :  { %488 = vmatprep.subr.bf16.mxu0 %v2883_v8  ;;  %v3400_v8 = vld [vmem:[%s3130_s17 + $0x8] sm:$0xff]  ;;  %s3743_s11 = sld [smem:[#allocation15_spill]]  ;;  %s3744_s15 = sld [smem:[#allocation18_spill]] }
  0x57   :  { %s3745_s16 = sld [smem:[#allocation20_spill]]  ;;  %s3746_s18 = sld [smem:[#allocation16_spill]] }
  0x58   :  { %s3747_s22 = sld [smem:[#allocation17_spill]]  ;;  %s3748_s23 = sld [smem:[#allocation19_spill]] }
  0x59   :  { %489 = vmatpush1.bf16.msra.mxu0 %v2885_v9  ;;  %s3749_s26 = sld [smem:[#allocation21_spill]]  ;;  %s3750_s28 = sld [smem:[#allocation24_spill]] }
  0x5a   :  { %490 = vmatprep.subr.bf16.mxu0 %v2886_v10  ;;  %s3751_s1 = sld [smem:[#allocation22_spill]]  ;;  %s3752_s2 = sld [smem:[#allocation23_spill]] }
  0x5d   :  { %491 = vmatpush1.bf16.msra.mxu0 %v2888_v11  ;;  %v3404_v11 = vld [vmem:[%s3130_s17 + $0x10] sm:$0xff] }
  0xc1   :  { %v188_v13 = vpop.permute.xlu0 %187 }
  0xc2   :  { %vm192_vm3 = vcmp.eq.s32.totalorder %v159_v12, %v188_v13  ;;  %v162_v22 = vpop.permute.xlu1 %161 }
  0xc3   :  { %v194_v15 = vsel %vm192_vm3, 1.0, %v3097_v7  ;;  %vm166_vm7 = vcmp.eq.s32.totalorder %v159_v12, %v162_v22 }
  0xc4   :  { %v168_v28 = vsel %vm166_vm7, 1.0, %v3097_v7 }
  0xc5   :  { %v191_v14 = vpop.permute.xlu0 %190 }
  0xc6   :  { %vm193_vm4 = vcmp.eq.s32.totalorder %v159_v12, %v191_v14  ;;  %v165_v26 = vpop.permute.xlu1 %164 }
  0xc7   :  { %v195_v16 = vsel %vm193_vm4, 1.0, %v3097_v7  ;;  %vm167_vm8 = vcmp.eq.s32.totalorder %v159_v12, %v165_v26 }
  0xc8   :  { %v196_v18 = vpack.c.bf16 %v195_v16, %v194_v15  ;;  %v169_v29 = vsel %vm167_vm8, 1.0, %v3097_v7 }
  0xc9   :  { %v170_v30 = vpack.c.bf16 %v169_v29, %v168_v28  ;;  %v260_v40 = vpop.permute.xlu0 %259  ;;  %v429_v29 = vld [vmem:[%s3165_s19] sm:$0x3]  ;;  %s3737_s19 = sld [smem:[#allocation9_spill]] }
  0xca   :  { %2524 = vmatmul.mubr.msk.bf16.vlgmr.msra.gmra.mrb[0].mxu1 %vm205_vm5, %v196_v18  ;;  %v263_v43 = vpop.permute.xlu1 %262  ;;  %vm264_vm10 = vcmp.eq.s32.totalorder %v260_v40, 1 }
  0xcb   :  { %2528 = vmatpush3.bf16.msra.mxu1 %v2870_v17  ;;  %2541 = vmatprep.mubr.msk.bf16.mxu1 %vm3098_vm2, %v3097_v7  ;;  %vm265_vm11 = vcmp.eq.s32.totalorder %v263_v43, 1  ;;  %v274_v47 = vsel %vm264_vm10, %v269_v41, %v273_v42 }
  0xcc   :  { %2529 = vmatprep.subr.bf16.mxu1 %v3097_v7  ;;  %v275_v52 = vsel %vm265_vm11, %v269_v41, %v273_v42 }
  0xcf   :  { %2530 = vmatpush3.bf16.msra.mxu1 %v2871_v19 }
  0xd0   :  { %2531 = vmatprep.subr.bf16.mxu1 %v3097_v7 }
  0xd3   :  { %2532 = vmatpush3.bf16.msra.mxu1 %v2872_v20  ;;  %v2333_v20 = vld [vmem:[%s3150_s3] ss:$0 sm:$0xff]  ;;  %s3734_s3 = sld [smem:[#allocation5_spill]] }
  0xd4   :  { %2533 = vmatprep.subr.bf16.mxu1 %v3097_v7 }
  0xd7   :  { %2534 = vmatpush3.bf16.msra.mxu1 %v2873_v21 }
  0xd8   :  { %2535 = vmatprep.subr.bf16.mxu1 %v3097_v7 }
  0xdb   :  { %2536 = vmatpush3.bf16.msra.mxu1 %v2874_v23 }
  0xdc   :  { %2537 = vmatprep.subr.bf16.mxu1 %v3097_v7 }
  0xdf   :  { %2538 = vmatpush3.bf16.msra.mxu1 %v2875_v24  ;;  %v2334_v24 = vld [vmem:[%s3155_s8] ss:$0 sm:$0xff]  ;;  %s3735_s8 = sld [smem:[#allocation6_spill]] }
  0xe0   :  { %2539 = vmatprep.subr.bf16.mxu1 %v3097_v7 }
  0xe3   :  { %2540 = vmatpush3.bf16.msra.mxu1 %v321_v27 }
  0xe6   :  { %2542 = vmatmul.mubr.msk.bf16.vlgmr.msra.gmra.mrb[4].mxu1 %vm315_vm9, %v170_v30  ;;  %v434_v30 = vrot.slane %v429_v29, %v3339_v38 }
 0x19d   :  { %v243_v31 = vpop.f32.mrb[0].mxu1 }
 0x19e   :  { %v2525_v32 = vpop.f32.mrb[1].mxu1 }
 0x19f   :  { %v246_v33 = vpop.f32.mrb[2].mxu1  ;;  %v438_v32 = vrot.slane %v429_v29, %v3341_v39  ;;  %v3424_v29 = vld [vmem:[%s3130_s17 + $0x38] sm:$0xff] }
 0x1a0   :  { %v2526_v34 = vpop.f32.mrb[3].mxu1 }
 0x1b9   :  { %v357_v44 = vpop.f32.mrb[4].mxu1 }
 0x1ba   :  { %v358_v45 = vadd.f32 %v357_v44, %v243_v31  ;;  %v2543_v46 = vpop.f32.mrb[5].mxu1 }
 0x1bb   :  { %v360_v48 = vpop.f32.mrb[6].mxu1 }
 0x1bc   :  { %v361_v49 = vadd.f32 %v360_v48, %v246_v33  ;;  %v2544_v50 = vpop.f32.mrb[7].mxu1  ;;  %v364_v51 = vadd.f32 %v358_v45, %v274_v47 }
 0x1be   :  { %v369_v53 = vsel %vm368_vm12, %v364_v51, 0.0  ;;  %v365_v54 = vadd.f32 %v361_v49, %v275_v52 }
 0x1bf   :  { %370 = vadd.xlane.f32.xlu0 %v369_v53 }
 0x1c0   :  { %v372_v55 = vsel %vm368_vm12, %v365_v54, 0.0 }
 0x1c1   :  { %373 = vadd.xlane.f32.xlu1 %v372_v55 }
 0x24c   :  { %v371_v56 = vpop.xlane.xlu0 %370 }
 0x24d   :  { %v376_v57 = vmul.f32 0.015625, %v371_v56 }
 0x24e   :  { %v374_v58 = vpop.xlane.xlu1 %373 }
 0x24f   :  { %v378_v59 = vsub.f32 %v364_v51, %v376_v57  ;;  %v377_v60 = vmul.f32 0.015625, %v374_v58 }
 0x251   :  { %v379_v61 = vsub.f32 %v365_v54, %v377_v60  ;;  %v380_v62 = vmul.f32 %v378_v59, %v378_v59 }
 0x253   :  { %v382_v63 = vsel %vm368_vm12, %v380_v62, 0.0  ;;  %v381_v0 = vmul.f32 %v379_v61, %v379_v61 }
 0x254   :  { %383 = vadd.xlane.f32.xlu0 %v382_v63 }
 0x255   :  { %v385_v1 = vsel %vm368_vm12, %v381_v0, 0.0 }
 0x258   :  { %386 = vadd.xlane.f32.xlu0 %v385_v1 }
 0x2e1   :  { %v384_v12 = vpop.xlane.xlu0 %383 }
 0x2e2   :  { %v388_v13 = vmul.f32 0.015625, %v384_v12 }
 0x2e4   :  { %v390_v14 = vadd.f32 1e-12, %v388_v13 }
 0x2e5   :  { %v387_v15 = vpop.xlane.xlu0 %386 }
 0x2e6   :  { %2941 = vrsqrt.f32 %v390_v14  ;;  %v389_v16 = vmul.f32 0.015625, %v387_v15 }
 0x2e8   :  { %v391_v17 = vadd.f32 1e-12, %v389_v16 }
 0x2ea   :  { %2943 = vrsqrt.f32 %v391_v17 }
 0x2f0   :  { %v2942_v18 = vpop.eup %2941 }
 0x2f1   :  { %v394_v19 = vmul.f32 %v2942_v18, %v378_v59  ;;  %v3412_v18 = vld [vmem:[%s3130_s17 + $0x20] sm:$0xff] }
 0x2f3   :  { %v402_v23 = vmul.f32 %v2333_v20, %v394_v19 }
 0x2f4   :  { %v2944_v21 = vpop.eup %2943 }
 0x2f5   :  { %v395_v22 = vmul.f32 %v2944_v21, %v379_v61  ;;  %v3359_v26 = vadd.f32 %v2334_v24, %v402_v23 }
 0x2f7   :  { %v403_v25 = vmul.f32 %v2333_v20, %v395_v22  ;;  %v3416_v22 = vld [vmem:[%s3130_s17 + $0x28] sm:$0xff] }
 0x2f9   :  { %v3361_v27 = vadd.f32 %v2334_v24, %v403_v25 }
 0x2fb   :  { %v428_v28 = vpack.c.bf16 %v3361_v27, %v3359_v26 }
 0x2fd   :  { %2343 = vmatmul.mubr.msk.bf16.vlgmr.msra.gmra.mrb[0].mxu0 %vm368_vm12, %v428_v28  ;;  %v3421_v28 = vld [vmem:[%s3130_s17 + $0x30] sm:$0xff]  ;;  %s3103_s17 = smov 16  }
 0x3d0   :  { %v518_v31 = vpop.f32.mrb[0].mxu0 }
 0x3d1   :  { %v520_v33 = vpop.f32.mrb[1].mxu0  ;;  %v519_v35 = vadd.f32 %v518_v31, %v434_v30 }
 0x3d2   :  { %v522_v34 = vpop.f32.mrb[2].mxu0  ;;  %v521_v40 = vadd.f32 %v520_v33, %v438_v32 }
 0x3d3   :  { %v523_v36 = vadd.f32 %v522_v34, %v434_v30  ;;  %v524_v37 = vpop.f32.mrb[3].mxu0 }
 0x3d4   :  { %v525_v41 = vadd.f32 %v524_v37, %v438_v32 }
 0x3d5   :  { %v2784_v42 = vpack.i.bf16 %v523_v36, %v519_v35  ;;  %v567_v43 = vpack.c.bf16 %v523_v36, %v519_v35 }
 0x3d6   :  { %v764_v44 = vpack.c.bf16 %v525_v41, %v521_v40  ;;  %v3369_v45 = vpack.i.bf16 %v525_v41, %v521_v40 }
 0x3d7   :  { %2785 = vrot.lane.b32.xlu0 %v2784_v42, %s3099_s0  ;;  %2780 = vrot.lane.b32.xlu1 %v2784_v42, %s3100_s5 }
 0x3d8   :  { %2553 = vmatprep.mubr.msk.bf16.mxu0 %vm205_vm5, %v567_v43  ;;  %2561 = vmatprep.subr.bf16.mxu1 %v764_v44 }
 0x3d9   :  { %2562 = vmatpush3.bf16.msra.mxu1 %v764_v44 }
 0x3db   :  { %2790 = vrot.lane.b32.xlu1 %v2784_v42, %s3101_s9 }
 0x3df   :  { %575 = vrot.lane.b32.xlu1 %v567_v43, %s3102_s13 }
 0x449   :  { %v2786_v46 = vpop.permute.xlu0 %2785  ;;  %v2781_v47 = vpop.permute.xlu1 %2780 }
 0x44a   :  { %v2788_v48 = vunpack.i.h.bf16 %v2786_v46  ;;  %v2787_v49 = vunpack.i.l.bf16 %v2786_v46  ;;  %v2783_v50 = vunpack.i.h.bf16 %v2781_v47  ;;  %v2782_v51 = vunpack.i.l.bf16 %v2781_v47 }
 0x44c   :  { %v569_v52 = vpack.c.bf16 %v2788_v48, %v2787_v49  ;;  %v568_v53 = vpack.c.bf16 %v2783_v50, %v2782_v51 }
 0x44d   :  { %v2791_v54 = vpop.permute.xlu1 %2790 }
 0x44e   :  { %v2793_v55 = vunpack.i.h.bf16 %v2791_v54  ;;  %v2792_v56 = vunpack.i.l.bf16 %v2791_v54  ;;  %577 = vrot.lane.b32.xlu0 %v568_v53, %s3102_s13  ;;  %579 = vrot.lane.b32.xlu1 %v569_v52, %s3102_s13 }
 0x450   :  { %v570_v57 = vpack.c.bf16 %v2793_v55, %v2792_v56 }
 0x451   :  { %v576_v58 = vpop.permute.xlu1 %575 }
 0x452   :  { %v596_v59 = vsel %vm205_vm5, %v576_v58, 0  ;;  %581 = vrot.lane.b32.xlu0 %v570_v57, %s3102_s13  ;;  %2721 = vmatprep.subr.msk.bf16.mxu0 %vm205_vm5, %v576_v58 }
 0x453   :  { %2546 = vmatpush3.bf16.xpose.msra.mxu0 %v596_v59 }
 0x4c0   :  { %v578_v60 = vpop.permute.xlu0 %577  ;;  %v580_v62 = vpop.permute.xlu1 %579 }
 0x4c1   :  { %v599_v61 = vsel %vm205_vm5, %v578_v60, 0  ;;  %2722 = vmatprep.subr.msk.bf16.mxu0 %vm205_vm5, %v578_v60  ;;  %v602_v63 = vsel %vm205_vm5, %v580_v62, 0 }
 0x4c2   :  { %2548 = vmatpush3.bf16.xpose.msra.mxu0 %v599_v61 }
 0x4c3   :  { %2723 = vmatprep.subr.msk.bf16.mxu0 %vm205_vm5, %v580_v62 }
 0x4c4   :  { %v582_v0 = vpop.permute.xlu0 %581 }
 0x4c5   :  { %v605_v1 = vsel %vm205_vm5, %v582_v0, 0 }
 0x4ca   :  { %2550 = vmatpush3.bf16.xpose.msra.mxu0 %v602_v63 }
 0x4cb   :  { %2724 = vmatprep.subr.msk.bf16.mxu0 %vm205_vm5, %v582_v0 }
 0x4d2   :  { %2552 = vmatpush3.bf16.xpose.msra.mxu0 %v605_v1 }
 0x4d3   :  { %2589 = vmatprep.subr.bf16.mxu0 %v3097_v7 }
 0x4d9   :  { %2554 = vmatmul.mubr.msk.bf16.vlgmr.msra.gmra.mrb[4].mxu0 %vm205_vm5, %v568_v53 }
 0x4da   :  { %2557 = vmatprep.mubr.msk.bf16.mxu0 %vm205_vm5, %v569_v52 }
 0x4e1   :  { %2558 = vmatmul.mubr.msk.bf16.gmra.mrb[8].mxu0 %vm205_vm5, %v570_v57 }
 0x4e2   :  { %2597 = vmatprep.mubr.msk.bf16.mxu0 %vm3098_vm2, %v3097_v7 }
 0x5ac   :  { %v2555_v4 = vpop.f32.mrb[4].mxu0 }
 0x5ad   :  { %v641_v5 = vpop.f32.mrb[5].mxu0  ;;  %v650_v16 = vadd.f32 %v2555_v4, %v3404_v11 }
 0x5ae   :  { %v642_v9 = vadd.f32 %v641_v5, %v3394_v3  ;;  %v2556_v10 = vpop.f32.mrb[6].mxu0 }
 0x5af   :  { %v644_v12 = vpop.f32.mrb[7].mxu0  ;;  %v653_v13 = vadd.f32 %v2556_v10, %v3397_v6  ;;  %v678_v25 = vsel %vm368_vm12, %v650_v16, -inf }
 0x5b0   :  { %v645_v14 = vadd.f32 %v644_v12, %v3400_v8  ;;  %v672_v15 = vsel %vm368_vm12, %v642_v9, -inf }
 0x5b1   :  { %673 = vmax.xlane.f32.xlu1 %v672_v15  ;;  %v681_v20 = vsel %vm368_vm12, %v653_v13, -inf }
 0x5b2   :  { %v675_v17 = vsel %vm368_vm12, %v645_v14, -inf }
 0x5b3   :  { %676 = vmax.xlane.f32.xlu0 %v675_v17 }
 0x5b4   :  { %v2559_v19 = vpop.f32.mrb[8].mxu0 }
 0x5b5   :  { %v657_v21 = vpop.f32.mrb[9].mxu0  ;;  %682 = vmax.xlane.f32.xlu1 %v681_v20  ;;  %v666_v32 = vadd.f32 %v2559_v19, %v3421_v28 }
 0x5b6   :  { %v658_v23 = vadd.f32 %v657_v21, %v3412_v18  ;;  %v2560_v24 = vpop.f32.mrb[10].mxu0 }
 0x5b7   :  { %v660_v30 = vpop.f32.mrb[11].mxu0  ;;  %679 = vmax.xlane.f32.xlu0 %v678_v25  ;;  %v669_v33 = vadd.f32 %v2560_v24, %v3424_v29  ;;  %v690_v36 = vsel %vm368_vm12, %v666_v32, -inf }
 0x5b8   :  { %v661_v31 = vadd.f32 %v660_v30, %v3416_v22  ;;  %v684_v34 = vsel %vm368_vm12, %v658_v23, -inf }
 0x5b9   :  { %v693_v37 = vsel %vm368_vm12, %v669_v33, -inf }
 0x5ba   :  { %v687_v35 = vsel %vm368_vm12, %v661_v31, -inf }
 0x5bb   :  { %685 = vmax.xlane.f32.xlu0 %v684_v34  ;;  %688 = vmax.xlane.f32.xlu1 %v687_v35 }
 0x5bf   :  { %691 = vmax.xlane.f32.xlu0 %v690_v36  ;;  %694 = vmax.xlane.f32.xlu1 %v693_v37 }
 0x63e   :  { %v674_v40 = vpop.xlane.xlu1 %673 }
 0x63f   :  { %v696_v44 = vsub.f32 %v642_v9, %v674_v40 }
 0x640   :  { %v677_v41 = vpop.xlane.xlu0 %676 }
 0x641   :  { %v697_v42 = vsub.f32 %v645_v14, %v677_v41  ;;  %v704_v51 = vmul.f32 1.442695, %v696_v44 }
 0x642   :  { %v683_v43 = vpop.xlane.xlu1 %682 }
 0x643   :  { %v699_v46 = vsub.f32 %v653_v13, %v683_v43  ;;  %v706_v47 = vmul.f32 1.442695, %v697_v42 }
 0x644   :  { %v680_v48 = vpop.xlane.xlu0 %679 }
 0x645   :  { %v710_v49 = vmul.f32 1.442695, %v699_v46  ;;  %v698_v50 = vsub.f32 %v650_v16, %v680_v48 }
 0x647   :  { %2945 = vpow2.f32 %v710_v49  ;;  %v708_v52 = vmul.f32 1.442695, %v698_v50 }
 0x648   :  { %2947 = vpow2.f32 %v706_v47  ;;  %v686_v53 = vpop.xlane.xlu0 %685  ;;  %v689_v13 = vpop.xlane.xlu1 %688 }
 0x649   :  { %2949 = vpow2.f32 %v708_v52  ;;  %v700_v54 = vsub.f32 %v658_v23, %v686_v53  ;;  %v701_v16 = vsub.f32 %v661_v31, %v689_v13 }
 0x64a   :  { %2951 = vpow2.f32 %v704_v51 }
 0x64b   :  { %v712_v57 = vmul.f32 1.442695, %v700_v54  ;;  %v714_v19 = vmul.f32 1.442695, %v701_v16  ;;  %v2891_v16 = vld [vmem:[%s3170_s24 + $0x10] sm:$0xff]  }
 0x64c   :  { %v692_v55 = vpop.xlane.xlu0 %691  ;;  %v695_v14 = vpop.xlane.xlu1 %694 }
 0x64d   :  { %v702_v56 = vsub.f32 %v666_v32, %v692_v55  ;;  %v703_v15 = vsub.f32 %v669_v33, %v695_v14 }
 0x64f   :  { %v716_v58 = vmul.f32 1.442695, %v702_v56  ;;  %v718_v17 = vmul.f32 1.442695, %v703_v15  ;;  %v2889_v15 = vld [vmem:[%s3170_s24] sm:$0xff]  }
 0x651   :  { %v3433_v59 = vpop.eup %2945  ;;  %2953 = vpow2.f32 %v716_v58 }
 0x652   :  { %v2948_v60 = vpop.eup %2947  ;;  %v729_v61 = vsel %vm368_vm12, %v3433_v59, 0.0  ;;  %2955 = vpow2.f32 %v712_v57 }
 0x653   :  { %v3437_v62 = vpop.eup %2949  ;;  %730 = vadd.xlane.f32.xlu1 %v729_v61  ;;  %v723_v1 = vsel %vm368_vm12, %v2948_v60, 0.0  ;;  %2957 = vpow2.f32 %v718_v17 }
 0x654   :  { %v726_v63 = vsel %vm368_vm12, %v3437_v62, 0.0  ;;  %v2952_v0 = vpop.eup %2951  ;;  %2959 = vpow2.f32 %v714_v19 }
 0x655   :  { %727 = vadd.xlane.f32.xlu0 %v726_v63  ;;  %v720_v4 = vsel %vm368_vm12, %v2952_v0, 0.0 }
 0x657   :  { %724 = vadd.xlane.f32.xlu1 %v723_v1 }
 0x659   :  { %721 = vadd.xlane.f32.xlu0 %v720_v4 }
 0x65b   :  { %v3443_v5 = vpop.eup %2953 }
 0x65c   :  { %v738_v9 = vsel %vm368_vm12, %v3443_v5, 0.0  ;;  %v3447_v10 = vpop.eup %2955 }
 0x65d   :  { %739 = vadd.xlane.f32.xlu0 %v738_v9  ;;  %v732_v12 = vsel %vm368_vm12, %v3447_v10, 0.0  ;;  %v2958_v20 = vpop.eup %2957 }
 0x65e   :  { %v741_v21 = vsel %vm368_vm12, %v2958_v20, 0.0  ;;  %v2960_v23 = vpop.eup %2959 }
 0x65f   :  { %v735_v24 = vsel %vm368_vm12, %v2960_v23, 0.0 }
 0x661   :  { %733 = vadd.xlane.f32.xlu0 %v732_v12 }
 0x668   :  { %2800 = vrot.lane.b32.xlu1 %v3369_v45, %s3099_s0 }
 0x677   :  { %2795 = vrot.lane.b32.xlu0 %v3369_v45, %s3100_s5 }
 0x68c   :  { %742 = vadd.xlane.f32.xlu1 %v741_v21 }
 0x690   :  { %736 = vadd.xlane.f32.xlu1 %v735_v24 }
 0x6a1   :  { %2805 = vrot.lane.b32.xlu1 %v3369_v45, %s3101_s9 }
 0x6e0   :  { %v731_v25 = vpop.xlane.xlu1 %730 }
 0x6e2   :  { %v728_v30 = vpop.xlane.xlu0 %727 }
 0x6e4   :  { %v725_v32 = vpop.xlane.xlu1 %724 }
 0x6e5   :  { %2961 = vrcp.f32 %v725_v32 }
 0x6e6   :  { %v722_v31 = vpop.xlane.xlu0 %721 }
 0x6e7   :  { %2963 = vrcp.f32 %v722_v31 }
 0x6e8   :  { %v2801_v36 = vpop.permute.xlu1 %2800  ;;  %2965 = vrcp.f32 %v728_v30 }
 0x6e9   :  { %v2803_v43 = vunpack.i.h.bf16 %v2801_v36  ;;  %v2802_v44 = vunpack.i.l.bf16 %v2801_v36  ;;  %2967 = vrcp.f32 %v731_v25 }
 0x6ea   :  { %v740_v33 = vpop.xlane.xlu0 %739 }
 0x6eb   :  { %v766_v49 = vpack.c.bf16 %v2803_v43, %v2802_v44 }
 0x6ee   :  { %v734_v34 = vpop.xlane.xlu0 %733 }
 0x6ef   :  { %v2962_v35 = vpop.eup %2961  ;;  %2969 = vrcp.f32 %v734_v34 }
 0x6f0   :  { %v753_v42 = vmul.f32 %v2962_v35, %v2948_v60 }
 0x6f1   :  { %v2964_v37 = vpop.eup %2963 }
 0x6f2   :  { %v2796_v40 = vpop.permute.xlu0 %2795  ;;  %v752_v41 = vmul.f32 %v2964_v37, %v2952_v0  ;;  %v2966_v52 = vpop.eup %2965 }
 0x6f3   :  { %v2798_v46 = vunpack.i.h.bf16 %v2796_v40  ;;  %v2797_v47 = vunpack.i.l.bf16 %v2796_v40  ;;  %v2968_v56 = vpop.eup %2967  ;;  %v754_v57 = vmul.f32 %v2966_v52, %v3437_v62  ;;  %v2352_v52 = vld [vmem:[%s3175_s30] ss:$0 sm:$0xff]  ;;  %s3739_s30 = sld [smem:[#allocation10_spill]] }
 0x6f4   :  { %v760_v48 = vpack.c.bf16 %v753_v42, %v752_v41  ;;  %v755_v61 = vmul.f32 %v2968_v56, %v3433_v59 }
 0x6f5   :  { %v765_v45 = vpack.c.bf16 %v2798_v46, %v2797_v47 }
 0x6f6   :  { %2569 = vmatprep.mubr.msk.bf16.mxu1 %vm368_vm12, %v760_v48  ;;  %v761_v0 = vpack.c.bf16 %v755_v61, %v754_v57 }
 0x6f7   :  { %2563 = vmatprep.subr.bf16.mxu1 %v765_v45 }
 0x6f8   :  { %2564 = vmatpush3.bf16.msra.mxu1 %v765_v45 }
 0x6f9   :  { %2565 = vmatprep.subr.bf16.mxu1 %v766_v49  ;;  %v2970_v60 = vpop.eup %2969 }
 0x6fa   :  { %v756_v4 = vmul.f32 %v2970_v60, %v3447_v10  ;;  %v2890_v10 = vld [vmem:[%s3170_s24 + $0x8] sm:$0xff]  }
 0x6fc   :  { %2566 = vmatpush3.bf16.msra.mxu1 %v766_v49 }
 0x719   :  { %v743_v50 = vpop.xlane.xlu1 %742 }
 0x71d   :  { %v737_v51 = vpop.xlane.xlu1 %736 }
 0x71e   :  { %2971 = vrcp.f32 %v737_v51 }
 0x71f   :  { %2973 = vrcp.f32 %v743_v50 }
 0x720   :  { %2975 = vrcp.f32 %v740_v33 }
 0x721   :  { %v2806_v53 = vpop.permute.xlu1 %2805 }
 0x722   :  { %v2808_v54 = vunpack.i.h.bf16 %v2806_v53  ;;  %v2807_v55 = vunpack.i.l.bf16 %v2806_v53 }
 0x724   :  { %v767_v58 = vpack.c.bf16 %v2808_v54, %v2807_v55 }
 0x726   :  { %2567 = vmatprep.subr.bf16.mxu1 %v767_v58 }
 0x727   :  { %2568 = vmatpush3.bf16.msra.mxu1 %v767_v58 }
 0x728   :  { %v2972_v63 = vpop.eup %2971  ;;  %2577 = vmatprep.subr.bf16.mxu1 %v3097_v7 }
 0x729   :  { %v2974_v1 = vpop.eup %2973  ;;  %v757_v9 = vmul.f32 %v2972_v63, %v2960_v23  ;;  %v2892_v23 = vld [vmem:[%s3170_s24 + $0x18] sm:$0xff]   ;;  %s3738_s24 = sld [smem:[#allocation12_spill]] }
 0x72a   :  { %2570 = vmatmul.mubr.msk.bf16.vlgmr.msra.gmra.mrb[8].mxu1 %vm368_vm12, %v761_v0  ;;  %v2976_v62 = vpop.eup %2975  ;;  %v759_v13 = vmul.f32 %v2974_v1, %v2958_v20 }
 0x72b   :  { %v762_v12 = vpack.c.bf16 %v757_v9, %v756_v4  ;;  %v758_v59 = vmul.f32 %v2976_v62, %v3443_v5  ;;  %2578 = vmatpush3.bf16.msra.mxu1 %v2889_v15  ;;  %v2893_v15 = vld [vmem:[%s3190_s20] sm:$0xff]  }
 0x72c   :  { %2579 = vmatprep.subr.bf16.mxu1 %v3097_v7  ;;  %2590 = vmatpush3.bf16.msra.mxu0 %v2893_v15 }
 0x72d   :  { %2573 = vmatprep.mubr.msk.bf16.mxu1 %vm368_vm12, %v762_v12  ;;  %v763_v14 = vpack.c.bf16 %v759_v13, %v758_v59  ;;  %2591 = vmatprep.subr.bf16.mxu0 %v3097_v7 }
 0x72f   :  { %2580 = vmatpush3.bf16.msra.mxu1 %v2890_v10  ;;  %v2894_v10 = vld [vmem:[%s3190_s20 + $0x8] sm:$0xff]  }
 0x730   :  { %2581 = vmatprep.subr.bf16.mxu1 %v3097_v7  ;;  %2592 = vmatpush3.bf16.msra.mxu0 %v2894_v10 }
 0x731   :  { %2593 = vmatprep.subr.bf16.mxu0 %v3097_v7 }
 0x732   :  { %2574 = vmatmul.mubr.msk.bf16.gmra.mrb[12].mxu1 %vm368_vm12, %v763_v14 }
 0x733   :  { %2585 = vmatprep.mubr.msk.bf16.mxu1 %vm3098_vm2, %v3097_v7  ;;  %2582 = vmatpush3.bf16.msra.mxu1 %v2891_v16  ;;  %v2895_v16 = vld [vmem:[%s3190_s20 + $0x10] sm:$0xff]  }
 0x734   :  { %2583 = vmatprep.subr.bf16.mxu1 %v3097_v7  ;;  %2594 = vmatpush3.bf16.msra.mxu0 %v2895_v16 }
 0x735   :  { %2595 = vmatprep.subr.bf16.mxu0 %v3097_v7 }
 0x737   :  { %2584 = vmatpush3.bf16.msra.mxu1 %v2892_v23 }
 0x738   :  { %2601 = vmatprep.subr.bf16.mxu1 %v3097_v7 }
 0x7fd   :  { %v2571_v17 = vpop.f32.mrb[8].mxu1 }
 0x7fe   :  { %v814_v19 = vpop.f32.mrb[9].mxu1 }
 0x7ff   :  { %v2572_v5 = vpop.f32.mrb[10].mxu1 }
 0x800   :  { %v2809_v20 = vpack.i.bf16 %v2572_v5, %v2571_v17  ;;  %v817_v21 = vpop.f32.mrb[11].mxu1  ;;  %v2896_v17 = vld [vmem:[%s3190_s20 + $0x18] sm:$0xff]   ;;  %v2898_v5 = vld [vmem:[%s3733_s29 + $0x8] sm:$0xff]   ;;  %s3740_s20 = sld [smem:[#allocation11_spill]] }
 0x801   :  { %2596 = vmatpush3.bf16.msra.mxu0 %v2896_v17 }
 0x802   :  { %2810 = vrot.lane.b32.xlu0 %v2809_v20, %s3103_s17 }
 0x805   :  { %v2575_v24 = vpop.f32.mrb[12].mxu1 }
 0x806   :  { %v830_v25 = vpop.f32.mrb[13].mxu1 }
 0x807   :  { %v2576_v30 = vpop.f32.mrb[14].mxu1 }
 0x808   :  { %v2819_v32 = vpack.i.bf16 %v2576_v30, %v2575_v24  ;;  %v833_v31 = vpop.f32.mrb[15].mxu1 }
 0x809   :  { %v2814_v33 = vpack.i.bf16 %v833_v31, %v830_v25  ;;  %v2358_v31 = vld [vmem:[%s3734_s3] ss:$0 sm:$0xff] }
 0x80a   :  { %2820 = vrot.lane.b32.xlu0 %v2819_v32, %s3104_s21 }
 0x80b   :  { %2815 = vrot.lane.b32.xlu1 %v2814_v33, %s3105_s25 }
 0x874   :  { %v2811_v34 = vpop.permute.xlu0 %2810 }
 0x875   :  { %v2813_v35 = vunpack.i.h.bf16 %v2811_v34  ;;  %v2812_v36 = vunpack.i.l.bf16 %v2811_v34 }
 0x877   :  { %v869_v43 = vsel %vm205_vm5, %v814_v19, %v2812_v36  ;;  %v870_v44 = vsel %vm205_vm5, %v817_v21, %v2813_v35  ;;  %v2897_v19 = vld [vmem:[%s3733_s29] sm:$0xff]  }
 0x87c   :  { %v2821_v37 = vpop.permute.xlu0 %2820 }
 0x87d   :  { %v2816_v40 = vpop.permute.xlu1 %2815  ;;  %v2823_v46 = vunpack.i.h.bf16 %v2821_v37  ;;  %v2822_v47 = vunpack.i.l.bf16 %v2821_v37  ;;  %v2359_v37 = vld [vmem:[%s3735_s8] ss:$0 sm:$0xff] }
 0x87e   :  { %v2818_v41 = vunpack.i.h.bf16 %v2816_v40  ;;  %v2817_v42 = vunpack.i.l.bf16 %v2816_v40 }
 0x880   :  { %v873_v48 = vsel %vm871_vm13, %v870_v44, %v2818_v41  ;;  %v872_v45 = vsel %vm871_vm13, %v869_v43, %v2817_v42  ;;  %v2899_v44 = vld [vmem:[%s3733_s29 + $0x10] sm:$0xff]  }
 0x881   :  { %v876_v49 = vsel %vm874_vm14, %v873_v48, %v2823_v46  ;;  %v875_v50 = vsel %vm874_vm14, %v872_v45, %v2822_v47  ;;  %v2900_v46 = vld [vmem:[%s3733_s29 + $0x18] sm:$0xff]   ;;  %v2901_v47 = vld [vmem:[%s3733_s29 + $0x20] sm:$0xff]   ;;  %v2902_v48 = vld [vmem:[%s3733_s29 + $0x28] sm:$0xff]  }
 0x882   :  { %v885_v51 = vpack.c.bf16 %v876_v49, %v875_v50  ;;  %v2903_v45 = vld [vmem:[%s3733_s29 + $0x30] sm:$0xff]   ;;  %v2360_v49 = vld [vmem:[%s3736_s14] ss:$0 sm:$0xff] }
 0x884   :  { %2586 = vmatmul.mubr.msk.bf16.vlgmr.msra.gmra.mrb[16].mxu1 %vm368_vm12, %v885_v51 }
 0x885   :  { %2617 = vmatprep.mubr.msk.bf16.mxu1 %vm3098_vm2, %v3097_v7  ;;  %2602 = vmatpush3.bf16.msra.mxu1 %v2897_v19 }
 0x886   :  { %2603 = vmatprep.subr.bf16.mxu1 %v3097_v7 }
 0x889   :  { %2604 = vmatpush3.bf16.msra.mxu1 %v2898_v5 }
 0x88a   :  { %2605 = vmatprep.subr.bf16.mxu1 %v3097_v7 }
 0x88d   :  { %2606 = vmatpush3.bf16.msra.mxu1 %v2899_v44 }
 0x88e   :  { %2607 = vmatprep.subr.bf16.mxu1 %v3097_v7 }
 0x891   :  { %2608 = vmatpush3.bf16.msra.mxu1 %v2900_v46 }
 0x892   :  { %2609 = vmatprep.subr.bf16.mxu1 %v3097_v7 }
 0x895   :  { %2610 = vmatpush3.bf16.msra.mxu1 %v2901_v47 }
 0x896   :  { %2611 = vmatprep.subr.bf16.mxu1 %v3097_v7 }
 0x899   :  { %2612 = vmatpush3.bf16.msra.mxu1 %v2902_v48 }
 0x89a   :  { %2613 = vmatprep.subr.bf16.mxu1 %v3097_v7 }
 0x89d   :  { %2614 = vmatpush3.bf16.msra.mxu1 %v2903_v45 }
 0x89e   :  { %2615 = vmatprep.subr.bf16.mxu1 %v3097_v7 }
 0x957   :  { %v954_v53 = vpop.f32.mrb[16].mxu1 }
 0x958   :  { %v955_v54 = vadd.f32 %v2352_v52, %v954_v53  ;;  %v2587_v55 = vpop.f32.mrb[17].mxu1 }
 0x959   :  { %v957_v56 = vpop.f32.mrb[18].mxu1 }
 0x95a   :  { %v958_v57 = vadd.f32 %v2352_v52, %v957_v56  ;;  %v2588_v58 = vpop.f32.mrb[19].mxu1  ;;  %v961_v60 = vadd.f32 %v955_v54, %v3359_v26 }
 0x95c   :  { %v965_v61 = vsel %vm368_vm12, %v961_v60, 0.0  ;;  %v962_v63 = vadd.f32 %v958_v57, %v3361_v27 }
 0x95d   :  { %966 = vadd.xlane.f32.xlu1 %v965_v61 }
 0x95e   :  { %v968_v0 = vsel %vm368_vm12, %v962_v63, 0.0 }
 0x95f   :  { %969 = vadd.xlane.f32.xlu0 %v968_v0 }
 0x9ea   :  { %v967_v1 = vpop.xlane.xlu1 %966 }
 0x9eb   :  { %v971_v4 = vmul.f32 0.015625, %v967_v1 }
 0x9ec   :  { %v970_v9 = vpop.xlane.xlu0 %969 }
 0x9ed   :  { %v973_v62 = vsub.f32 %v961_v60, %v971_v4  ;;  %v972_v12 = vmul.f32 0.015625, %v970_v9 }
 0x9ef   :  { %v974_v13 = vsub.f32 %v962_v63, %v972_v12  ;;  %v975_v59 = vmul.f32 %v973_v62, %v973_v62  ;;  %v2366_v12 = vld [vmem:[%s3737_s19] ss:$0 sm:$0xff] }
 0x9f1   :  { %v977_v26 = vsel %vm368_vm12, %v975_v59, 0.0  ;;  %v976_v14 = vmul.f32 %v974_v13, %v974_v13 }
 0x9f2   :  { %978 = vadd.xlane.f32.xlu0 %v977_v26 }
 0x9f3   :  { %v980_v27 = vsel %vm368_vm12, %v976_v14, 0.0 }
 0x9f4   :  { %981 = vadd.xlane.f32.xlu1 %v980_v27 }
 0xa7f   :  { %v979_v20 = vpop.xlane.xlu0 %978 }
 0xa80   :  { %v983_v21 = vmul.f32 0.015625, %v979_v20 }
 0xa81   :  { %v982_v23 = vpop.xlane.xlu1 %981 }
 0xa82   :  { %v985_v24 = vadd.f32 1e-12, %v983_v21  ;;  %v984_v25 = vmul.f32 0.015625, %v982_v23 }
 0xa84   :  { %2977 = vrsqrt.f32 %v985_v24  ;;  %v986_v30 = vadd.f32 1e-12, %v984_v25 }
 0xa86   :  { %2979 = vrsqrt.f32 %v986_v30 }
 0xa8e   :  { %v2978_v32 = vpop.eup %2977 }
 0xa8f   :  { %v989_v33 = vmul.f32 %v2978_v32, %v973_v62 }
 0xa90   :  { %v2980_v34 = vpop.eup %2979 }
 0xa91   :  { %v997_v35 = vmul.f32 %v2358_v31, %v989_v33  ;;  %v990_v36 = vmul.f32 %v2980_v34, %v974_v13  ;;  %v2907_v34 = vld [vmem:[%s3738_s24 + $0x4] ss:$8 sps:$4 sm:$0xff]  }
 0xa92   :  { %1324 = vmatprep.subr.bf16.mxu0 %v2907_v34 }
 0xa93   :  { %v998_v40 = vmul.f32 %v2358_v31, %v990_v36  ;;  %v1005_v41 = vadd.f32 %v2359_v37, %v997_v35  ;;  %v2905_v35 = vld [vmem:[%s3738_s24] ss:$8 sps:$4 sm:$0xff]   ;;  %v2910_v36 = vld [vmem:[%s3738_s24 + $0x14] ss:$8 sps:$4 sm:$0xff]  }
 0xa95   :  { %v1006_v42 = vadd.f32 %v2359_v37, %v998_v40  ;;  %v2908_v37 = vld [vmem:[%s3738_s24 + $0x10] ss:$8 sps:$4 sm:$0xff]   ;;  %v2913_v40 = vld [vmem:[%s3738_s24 + $0x24] ss:$8 sps:$4 sm:$0xff]  }
 0xa97   :  { %v1015_v43 = vpack.c.bf16 %v1006_v42, %v1005_v41 }
 0xa99   :  { %2598 = vmatmul.mubr.msk.bf16.vlgmr.msra.gmra.mrb[12].mxu0 %vm368_vm12, %v1015_v43  ;;  %v2916_v43 = vld [vmem:[%s3738_s24 + $0x34] ss:$8 sps:$4 sm:$0xff]  }
 0xa9a   :  { %1356 = vmatprep.mubr.bf16.mxu0 %v3096_v2  ;;  %v2904_v2 = vld [vmem:[%s3733_s29 + $0x38] sm:$0xff]   ;;  %1325 = vmatpush1.bf16.msra.mxu0 %v2905_v35 }
 0xa9b   :  { %2616 = vmatpush3.bf16.msra.mxu1 %v2904_v2  ;;  %1326 = vmatprep.subr.bf16.mxu0 %v2910_v36 }
 0xa9e   :  { %1327 = vmatpush1.bf16.msra.mxu0 %v2908_v37 }
 0xa9f   :  { %1328 = vmatprep.subr.bf16.mxu0 %v2913_v40 }
 0xb6c   :  { %v1084_v50 = vpop.f32.mrb[12].mxu0 }
 0xb6d   :  { %v1085_v51 = vadd.f32 %v2360_v49, %v1084_v50  ;;  %v2599_v52 = vpop.f32.mrb[13].mxu0  ;;  %v2375_v50 = vld [vmem:[%s3739_s30] ss:$0 sm:$0xff] }
 0xb6e   :  { %v1087_v53 = vpop.f32.mrb[14].mxu0 }
 0xb6f   :  { %v1093_v54 = vmul.f32 0.70710677, %v1085_v51  ;;  %v1088_v55 = vadd.f32 %v2360_v49, %v1087_v53  ;;  %v2600_v56 = vpop.f32.mrb[15].mxu0  ;;  %v1091_v63 = vmul.f32 0.5, %v1085_v51 }
 0xb71   :  { %2981 = verf.f32 %v1093_v54  ;;  %v1094_v57 = vmul.f32 0.70710677, %v1088_v55  ;;  %v1092_v0 = vmul.f32 0.5, %v1088_v55  ;;  %v2376_v55 = vld [vmem:[%s3740_s20] ss:$0 sm:$0xff] }
 0xb73   :  { %2983 = verf.f32 %v1094_v57 }
 0xb7b   :  { %v2982_v58 = vpop.eup %2981 }
 0xb7c   :  { %v1097_v60 = vadd.f32 1.0, %v2982_v58 }
 0xb7d   :  { %v2984_v61 = vpop.eup %2983 }
 0xb7e   :  { %v1098_v1 = vadd.f32 1.0, %v2984_v61  ;;  %v1099_v4 = vmul.f32 %v1097_v60, %v1091_v63  ;;  %v1269_v61 = vld [vmem:[%s3741_s7] sm:$0x3] }
 0xb7f   :  { %v1274_v63 = vrot.slane %v1269_v61, %v3339_v38 }
 0xb80   :  { %v1100_v9 = vmul.f32 %v1098_v1, %v1092_v0  ;;  %v1278_v1 = vrot.slane %v1269_v61, %v3341_v39 }
 0xb82   :  { %v1117_v62 = vpack.c.bf16 %v1100_v9, %v1099_v4 }
 0xb84   :  { %2618 = vmatmul.mubr.bf16.vlgmr.msra.gmra.mrb[20].mxu1 %v1117_v62 }
 0xc57   :  { %v1207_v13 = vpop.f32.mrb[20].mxu1 }
 0xc58   :  { %v1208_v59 = vadd.f32 %v2366_v12, %v1207_v13  ;;  %v2619_v26 = vpop.f32.mrb[21].mxu1 }
 0xc59   :  { %v1210_v14 = vpop.f32.mrb[22].mxu1 }
 0xc5a   :  { %v1211_v27 = vadd.f32 %v2366_v12, %v1210_v14  ;;  %v2620_v15 = vpop.f32.mrb[23].mxu1  ;;  %v1214_v10 = vadd.f32 %v1208_v59, %v1005_v41  ;;  %v2911_v41 = vld [vmem:[%s3738_s24 + $0x20] ss:$8 sps:$4 sm:$0xff]  }
 0xc5b   :  { %1329 = vmatpush1.bf16.msra.mxu0 %v2911_v41 }
 0xc5c   :  { %v1218_v16 = vsel %vm368_vm12, %v1214_v10, 0.0  ;;  %v1215_v17 = vadd.f32 %v1211_v27, %v1006_v42  ;;  %v2914_v42 = vld [vmem:[%s3738_s24 + $0x30] ss:$8 sps:$4 sm:$0xff]   ;;  %1330 = vmatprep.subr.bf16.mxu0 %v2916_v43 }
 0xc5d   :  { %1219 = vadd.xlane.f32.xlu0 %v1218_v16 }
 0xc5e   :  { %v1221_v19 = vsel %vm368_vm12, %v1215_v17, 0.0 }
 0xc5f   :  { %1222 = vadd.xlane.f32.xlu1 %v1221_v19  ;;  %1331 = vmatpush1.bf16.msra.mxu0 %v2914_v42 }
 0xcea   :  { %v1220_v5 = vpop.xlane.xlu0 %1219 }
 0xceb   :  { %v1224_v20 = vmul.f32 0.015625, %v1220_v5 }
 0xcec   :  { %v1223_v21 = vpop.xlane.xlu1 %1222 }
 0xced   :  { %v1226_v23 = vsub.f32 %v1214_v10, %v1224_v20  ;;  %v1225_v24 = vmul.f32 0.015625, %v1223_v21 }
 0xcef   :  { %v1227_v25 = vsub.f32 %v1215_v17, %v1225_v24  ;;  %v1228_v30 = vmul.f32 %v1226_v23, %v1226_v23 }
 0xcf1   :  { %v1230_v32 = vsel %vm368_vm12, %v1228_v30, 0.0  ;;  %v1229_v31 = vmul.f32 %v1227_v25, %v1227_v25 }
 0xcf2   :  { %1231 = vadd.xlane.f32.xlu0 %v1230_v32 }
 0xcf3   :  { %v1233_v33 = vsel %vm368_vm12, %v1229_v31, 0.0 }
 0xcf4   :  { %1234 = vadd.xlane.f32.xlu1 %v1233_v33 }
 0xd7f   :  { %v1232_v44 = vpop.xlane.xlu0 %1231 }
 0xd80   :  { %v1236_v46 = vmul.f32 0.015625, %v1232_v44 }
 0xd81   :  { %v1235_v47 = vpop.xlane.xlu1 %1234 }
 0xd82   :  { %v1238_v48 = vadd.f32 1e-12, %v1236_v46  ;;  %v1237_v45 = vmul.f32 0.015625, %v1235_v47 }
 0xd84   :  { %2985 = vrsqrt.f32 %v1238_v48  ;;  %v1239_v2 = vadd.f32 1e-12, %v1237_v45 }
 0xd86   :  { %2987 = vrsqrt.f32 %v1239_v2 }
 0xd8e   :  { %v2986_v49 = vpop.eup %2985 }
 0xd8f   :  { %v1242_v51 = vmul.f32 %v2986_v49, %v1226_v23 }
 0xd90   :  { %v2988_v52 = vpop.eup %2987 }
 0xd91   :  { %v1250_v53 = vmul.f32 %v2375_v50, %v1242_v51  ;;  %v1243_v54 = vmul.f32 %v2988_v52, %v1227_v25 }
 0xd93   :  { %v1251_v56 = vmul.f32 %v2375_v50, %v1243_v54  ;;  %v3539_v57 = vadd.f32 %v2376_v55, %v1250_v53 }
 0xd95   :  { %v3541_v58 = vadd.f32 %v2376_v55, %v1251_v56 }
 0xd97   :  { %v1268_v60 = vpack.c.bf16 %v3541_v58, %v3539_v57 }
 0xd99   :  { %2385 = vmatmul.mubr.msk.bf16.vlgmr.msra.gmra.mrb[16].mxu0 %vm368_vm12, %v1268_v60 }
 0xe6c   :  { %v1358_v0 = vpop.f32.mrb[16].mxu0 }
 0xe6d   :  { %v1360_v4 = vpop.f32.mrb[17].mxu0  ;;  %v1359_v62 = vadd.f32 %v1358_v0, %v1274_v63 }
 0xe6e   :  { %v1362_v9 = vpop.f32.mrb[18].mxu0  ;;  %v1361_v59 = vadd.f32 %v1360_v4, %v1278_v1 }
 0xe6f   :  { %v1363_v12 = vadd.f32 %v1362_v9, %v1274_v63  ;;  %v1364_v13 = vpop.f32.mrb[19].mxu0 }
 0xe70   :  { %v1365_v26 = vadd.f32 %v1364_v13, %v1278_v1 }
 0xe71   :  { %v2829_v14 = vpack.i.bf16 %v1363_v12, %v1359_v62  ;;  %v1407_v27 = vpack.c.bf16 %v1363_v12, %v1359_v62 }
 0xe72   :  { %v1604_v15 = vpack.c.bf16 %v1365_v26, %v1361_v59  ;;  %v3549_v10 = vpack.i.bf16 %v1365_v26, %v1361_v59 }
 0xe73   :  { %2830 = vrot.lane.b32.xlu1 %v2829_v14, %s3099_s0  ;;  %2825 = vrot.lane.b32.xlu0 %v2829_v14, %s3100_s5 }
 0xe74   :  { %2629 = vmatprep.mubr.msk.bf16.mxu0 %vm205_vm5, %v1407_v27  ;;  %2637 = vmatprep.subr.bf16.mxu1 %v1604_v15 }
 0xe75   :  { %2638 = vmatpush3.bf16.msra.mxu1 %v1604_v15 }
 0xe77   :  { %2835 = vrot.lane.b32.xlu1 %v2829_v14, %s3101_s9  ;;  %1415 = vrot.lane.b32.xlu0 %v1407_v27, %s3102_s13 }
 0xee5   :  { %v2831_v38 = vpop.permute.xlu1 %2830  ;;  %v2826_v39 = vpop.permute.xlu0 %2825 }
 0xee6   :  { %v2833_v16 = vunpack.i.h.bf16 %v2831_v38  ;;  %v2832_v17 = vunpack.i.l.bf16 %v2831_v38  ;;  %v2828_v19 = vunpack.i.h.bf16 %v2826_v39  ;;  %v2827_v5 = vunpack.i.l.bf16 %v2826_v39 }
 0xee8   :  { %v1409_v20 = vpack.c.bf16 %v2833_v16, %v2832_v17  ;;  %v1408_v21 = vpack.c.bf16 %v2828_v19, %v2827_v5 }
 0xee9   :  { %v2836_v23 = vpop.permute.xlu1 %2835  ;;  %v1416_v24 = vpop.permute.xlu0 %1415 }
 0xeea   :  { %v2838_v25 = vunpack.i.h.bf16 %v2836_v23  ;;  %v2837_v30 = vunpack.i.l.bf16 %v2836_v23  ;;  %v1436_v32 = vsel %vm205_vm5, %v1416_v24, 0  ;;  %1417 = vrot.lane.b32.xlu1 %v1408_v21, %s3102_s13  ;;  %1419 = vrot.lane.b32.xlu0 %v1409_v20, %s3102_s13 }
 0xeeb   :  { %2725 = vmatprep.subr.msk.bf16.mxu0 %vm205_vm5, %v1416_v24 }
 0xeec   :  { %v1410_v31 = vpack.c.bf16 %v2838_v25, %v2837_v30  ;;  %2622 = vmatpush3.bf16.xpose.msra.mxu0 %v1436_v32 }
 0xeee   :  { %1421 = vrot.lane.b32.xlu1 %v1410_v31, %s3102_s13 }
 0xf5c   :  { %v1418_v33 = vpop.permute.xlu1 %1417  ;;  %v1420_v35 = vpop.permute.xlu0 %1419 }
 0xf5d   :  { %v1439_v34 = vsel %vm205_vm5, %v1418_v33, 0  ;;  %2726 = vmatprep.subr.msk.bf16.mxu0 %vm205_vm5, %v1418_v33  ;;  %v1442_v36 = vsel %vm205_vm5, %v1420_v35, 0 }
 0xf5e   :  { %2624 = vmatpush3.bf16.xpose.msra.mxu0 %v1439_v34 }
 0xf5f   :  { %2727 = vmatprep.subr.msk.bf16.mxu0 %vm205_vm5, %v1420_v35 }
 0xf60   :  { %v1422_v37 = vpop.permute.xlu1 %1421 }
 0xf61   :  { %v1445_v40 = vsel %vm205_vm5, %v1422_v37, 0 }
 0xf66   :  { %2626 = vmatpush3.bf16.xpose.msra.mxu0 %v1442_v36 }
 0xf67   :  { %2728 = vmatprep.subr.msk.bf16.mxu0 %vm205_vm5, %v1422_v37 }
 0xf6e   :  { %2628 = vmatpush3.bf16.xpose.msra.mxu0 %v1445_v40 }
 0xf6f   :  { %2665 = vmatprep.subr.bf16.mxu0 %v3097_v7 }
 0xf75   :  { %2630 = vmatmul.mubr.msk.bf16.vlgmr.msra.gmra.mrb[20].mxu0 %vm205_vm5, %v1408_v21 }
 0xf76   :  { %2633 = vmatprep.mubr.msk.bf16.mxu0 %vm205_vm5, %v1409_v20 }
 0xf7d   :  { %2634 = vmatmul.mubr.msk.bf16.gmra.mrb[24].mxu0 %vm205_vm5, %v1410_v31 }
 0xf7e   :  { %2673 = vmatprep.mubr.msk.bf16.mxu0 %vm3098_vm2, %v3097_v7 }
0x1048   :  { %v2631_v41 = vpop.f32.mrb[20].mxu0 }
0x1049   :  { %v1481_v42 = vpop.f32.mrb[21].mxu0  ;;  %v1490_v47 = vadd.f32 %v2631_v41, %v3404_v11 }
0x104a   :  { %v1482_v43 = vadd.f32 %v1481_v42, %v3394_v3  ;;  %v2632_v44 = vpop.f32.mrb[22].mxu0 }
0x104b   :  { %v1484_v46 = vpop.f32.mrb[23].mxu0  ;;  %v1493_v49 = vadd.f32 %v2632_v44, %v3397_v6  ;;  %v1518_v51 = vsel %vm368_vm12, %v1490_v47, -inf }
0x104c   :  { %v1485_v48 = vadd.f32 %v1484_v46, %v3400_v8  ;;  %v1512_v45 = vsel %vm368_vm12, %v1482_v43, -inf }
0x104d   :  { %1513 = vmax.xlane.f32.xlu0 %v1512_v45  ;;  %v1521_v56 = vsel %vm368_vm12, %v1493_v49, -inf }
0x104e   :  { %v1515_v2 = vsel %vm368_vm12, %v1485_v48, -inf }
0x104f   :  { %1516 = vmax.xlane.f32.xlu1 %v1515_v2 }
0x1050   :  { %v2635_v50 = vpop.f32.mrb[24].mxu0 }
0x1051   :  { %v1497_v52 = vpop.f32.mrb[25].mxu0  ;;  %1519 = vmax.xlane.f32.xlu0 %v1518_v51  ;;  %v1506_v11 = vadd.f32 %v2635_v50, %v3421_v28 }
0x1052   :  { %v1498_v3 = vadd.f32 %v1497_v52, %v3412_v18  ;;  %v2636_v53 = vpop.f32.mrb[26].mxu0 }
0x1053   :  { %v1500_v54 = vpop.f32.mrb[27].mxu0  ;;  %v1509_v6 = vadd.f32 %v2636_v53, %v3424_v29  ;;  %v1530_v60 = vsel %vm368_vm12, %v1506_v11, -inf }
0x1054   :  { %v1501_v8 = vadd.f32 %v1500_v54, %v3416_v22  ;;  %v1524_v55 = vsel %vm368_vm12, %v1498_v3, -inf }
0x1055   :  { %1525 = vmax.xlane.f32.xlu1 %v1524_v55  ;;  %1522 = vmax.xlane.f32.xlu0 %v1521_v56  ;;  %v1533_v18 = vsel %vm368_vm12, %v1509_v6, -inf }
0x1056   :  { %v1527_v61 = vsel %vm368_vm12, %v1501_v8, -inf }
0x1059   :  { %1531 = vmax.xlane.f32.xlu1 %v1530_v60  ;;  %1528 = vmax.xlane.f32.xlu0 %v1527_v61 }
0x105d   :  { %1534 = vmax.xlane.f32.xlu0 %v1533_v18 }
0x106a   :  { %2840 = vrot.lane.b32.xlu1 %v3549_v10, %s3100_s5 }
0x10da   :  { %v1514_v22 = vpop.xlane.xlu0 %1513 }
0x10db   :  { %v1536_v28 = vsub.f32 %v1482_v43, %v1514_v22 }
0x10dc   :  { %v1517_v63 = vpop.xlane.xlu1 %1516 }
0x10dd   :  { %v1544_v4 = vmul.f32 1.442695, %v1536_v28  ;;  %v1537_v29 = vsub.f32 %v1485_v48, %v1517_v63 }
0x10de   :  { %v1520_v0 = vpop.xlane.xlu0 %1519 }
0x10df   :  { %v1538_v1 = vsub.f32 %v1490_v47, %v1520_v0  ;;  %v1546_v14 = vmul.f32 1.442695, %v1537_v29 }
0x10e1   :  { %v1548_v9 = vmul.f32 1.442695, %v1538_v1 }
0x10e2   :  { %v1526_v62 = vpop.xlane.xlu1 %1525  ;;  %v1523_v12 = vpop.xlane.xlu0 %1522 }
0x10e3   :  { %2989 = vpow2.f32 %v1548_v9  ;;  %v1539_v13 = vsub.f32 %v1493_v49, %v1523_v12  ;;  %v1540_v59 = vsub.f32 %v1498_v3, %v1526_v62 }
0x10e4   :  { %2991 = vpow2.f32 %v1544_v4 }
0x10e5   :  { %v1550_v26 = vmul.f32 1.442695, %v1539_v13  ;;  %v1552_v39 = vmul.f32 1.442695, %v1540_v59 }
0x10e6   :  { %v1532_v27 = vpop.xlane.xlu1 %1531  ;;  %v1529_v15 = vpop.xlane.xlu0 %1528 }
0x10e7   :  { %v1542_v38 = vsub.f32 %v1506_v11, %v1532_v27  ;;  %2993 = vpow2.f32 %v1550_v26  ;;  %v1541_v17 = vsub.f32 %v1501_v8, %v1529_v15 }
0x10e8   :  { %2995 = vpow2.f32 %v1546_v14 }
0x10e9   :  { %v1556_v16 = vmul.f32 1.442695, %v1542_v38  ;;  %v1554_v32 = vmul.f32 1.442695, %v1541_v17  ;;  %v2917_v17 = vld [vmem:[%s3742_s10] sm:$0xff]  }
0x10ea   :  { %v2841_v19 = vpop.permute.xlu1 %2840  ;;  %v1535_v5 = vpop.xlane.xlu0 %1534 }
0x10eb   :  { %2997 = vpow2.f32 %v1556_v16  ;;  %v2843_v20 = vunpack.i.h.bf16 %v2841_v19  ;;  %v2842_v21 = vunpack.i.l.bf16 %v2841_v19  ;;  %v1543_v23 = vsub.f32 %v1509_v6, %v1535_v5  ;;  %v2918_v19 = vld [vmem:[%s3742_s10 + $0x8] sm:$0xff]   ;;  %v2919_v5 = vld [vmem:[%s3742_s10 + $0x10] sm:$0xff]  }
0x10ec   :  { %2999 = vpow2.f32 %v1552_v39 }
0x10ed   :  { %v3591_v24 = vpop.eup %2989  ;;  %v1605_v25 = vpack.c.bf16 %v2843_v20, %v2842_v21  ;;  %v1558_v30 = vmul.f32 1.442695, %v1543_v23 }
0x10ee   :  { %v1566_v31 = vsel %vm368_vm12, %v3591_v24, 0.0  ;;  %v2992_v33 = vpop.eup %2991 }
0x10ef   :  { %3001 = vpow2.f32 %v1558_v30  ;;  %2639 = vmatprep.subr.bf16.mxu1 %v1605_v25  ;;  %1567 = vadd.xlane.f32.xlu1 %v1566_v31  ;;  %v1560_v35 = vsel %vm368_vm12, %v2992_v33, 0.0 }
0x10f0   :  { %2640 = vmatpush3.bf16.msra.mxu1 %v1605_v25  ;;  %3003 = vpow2.f32 %v1554_v32 }
0x10f1   :  { %v2994_v34 = vpop.eup %2993 }
0x10f2   :  { %v1569_v36 = vsel %vm368_vm12, %v2994_v34, 0.0  ;;  %v2996_v37 = vpop.eup %2995 }
0x10f3   :  { %1561 = vadd.xlane.f32.xlu1 %v1560_v35  ;;  %1570 = vadd.xlane.f32.xlu0 %v1569_v36  ;;  %v1563_v43 = vsel %vm368_vm12, %v2996_v37, 0.0 }
0x10f5   :  { %v3597_v40 = vpop.eup %2997 }
0x10f6   :  { %v1578_v41 = vsel %vm368_vm12, %v3597_v40, 0.0  ;;  %v3000_v42 = vpop.eup %2999 }
0x10f7   :  { %1579 = vadd.xlane.f32.xlu1 %v1578_v41  ;;  %1564 = vadd.xlane.f32.xlu0 %v1563_v43  ;;  %v1572_v46 = vsel %vm368_vm12, %v3000_v42, 0.0 }
0x10f9   :  { %v3002_v44 = vpop.eup %3001 }
0x10fa   :  { %v1581_v47 = vsel %vm368_vm12, %v3002_v44, 0.0  ;;  %v3004_v48 = vpop.eup %3003 }
0x10fb   :  { %1573 = vadd.xlane.f32.xlu1 %v1572_v46  ;;  %1582 = vadd.xlane.f32.xlu0 %v1581_v47  ;;  %v1575_v45 = vsel %vm368_vm12, %v3004_v48, 0.0 }
0x10ff   :  { %1576 = vadd.xlane.f32.xlu0 %v1575_v45 }
0x110c   :  { %2850 = vrot.lane.b32.xlu1 %v3549_v10, %s3101_s9 }
0x1115   :  { %2845 = vrot.lane.b32.xlu0 %v3549_v10, %s3099_s0  ;;  %s3106_s0 = smov [#allocation2]  }
0x1116   :  { %s2278_s5 = sshll.u32 %s3106_s0, 4  ;;  %s2279_s5 = int_to_ptr.vmem [resolvable:$true] %s2278_s5 }
0x1117   :  { %p3040_p1 = scmp.lt.s32.totalorder %s2279_s5, %s2279_s5 }
0x117c   :  { %v1568_v2 = vpop.xlane.xlu1 %1567 }
0x1180   :  { %v1562_v49 = vpop.xlane.xlu1 %1561  ;;  %v1571_v50 = vpop.xlane.xlu0 %1570 }
0x1181   :  { %3005 = vrcp.f32 %v1562_v49 }
0x1184   :  { %v1580_v51 = vpop.xlane.xlu1 %1579  ;;  %v1565_v52 = vpop.xlane.xlu0 %1564 }
0x1185   :  { %3007 = vrcp.f32 %v1565_v52 }
0x1186   :  { %3009 = vrcp.f32 %v1571_v50 }
0x1187   :  { %3011 = vrcp.f32 %v1568_v2 }
0x1188   :  { %v1574_v3 = vpop.xlane.xlu1 %1573  ;;  %v1583_v53 = vpop.xlane.xlu0 %1582 }
0x1189   :  { %3013 = vrcp.f32 %v1574_v3 }
0x118b   :  { %v3006_v11 = vpop.eup %3005 }
0x118c   :  { %v1577_v54 = vpop.xlane.xlu0 %1576  ;;  %v2851_v8 = vpop.permute.xlu1 %2850  ;;  %v1592_v6 = vmul.f32 %v3006_v11, %v2992_v33 }
0x118d   :  { %3015 = vrcp.f32 %v1577_v54  ;;  %v2853_v60 = vunpack.i.h.bf16 %v2851_v8  ;;  %v2852_v61 = vunpack.i.l.bf16 %v2851_v8 }
0x118e   :  { %3017 = vrcp.f32 %v1583_v53  ;;  %v2394_v53 = vld [vmem:[%s3743_s11] ss:$0 sm:$0xff] }
0x118f   :  { %v3008_v55 = vpop.eup %3007  ;;  %3019 = vrcp.f32 %v1580_v51  ;;  %v1607_v4 = vpack.c.bf16 %v2853_v60, %v2852_v61 }
0x1190   :  { %v2846_v56 = vpop.permute.xlu0 %2845  ;;  %v1593_v10 = vmul.f32 %v3008_v55, %v2996_v37  ;;  %v3010_v0 = vpop.eup %3009 }
0x1191   :  { %v2848_v18 = vunpack.i.h.bf16 %v2846_v56  ;;  %v2847_v22 = vunpack.i.l.bf16 %v2846_v56  ;;  %v3012_v1 = vpop.eup %3011  ;;  %v1595_v62 = vmul.f32 %v3010_v0, %v2994_v34 }
0x1192   :  { %v1600_v28 = vpack.c.bf16 %v1593_v10, %v1592_v6  ;;  %v1594_v13 = vmul.f32 %v3012_v1, %v3591_v24  ;;  %v2920_v24 = vld [vmem:[%s3742_s10 + $0x18] sm:$0xff]  }
0x1193   :  { %v1606_v63 = vpack.c.bf16 %v2848_v18, %v2847_v22  ;;  %v3014_v9 = vpop.eup %3013 }
0x1194   :  { %2645 = vmatprep.mubr.msk.bf16.mxu1 %vm368_vm12, %v1600_v28  ;;  %v1596_v59 = vmul.f32 %v3014_v9, %v3000_v42  ;;  %v1601_v26 = vpack.c.bf16 %v1595_v62, %v1594_v13  ;;  %v2921_v62 = vld [vmem:[%s3744_s15] sm:$0xff]   ;;  %v2923_v13 = vld [vmem:[%s3744_s15 + $0x10] sm:$0xff]  }
0x1195   :  { %2641 = vmatprep.subr.bf16.mxu1 %v1606_v63  ;;  %2666 = vmatpush3.bf16.msra.mxu0 %v2921_v62 }
0x1196   :  { %2642 = vmatpush3.bf16.msra.mxu1 %v1606_v63  ;;  %2667 = vmatprep.subr.bf16.mxu0 %v3097_v7 }
0x1197   :  { %v3016_v29 = vpop.eup %3015  ;;  %2643 = vmatprep.subr.bf16.mxu1 %v1607_v4 }
0x1198   :  { %v1597_v12 = vmul.f32 %v3016_v29, %v3004_v48  ;;  %v3018_v14 = vpop.eup %3017 }
0x1199   :  { %v3020_v15 = vpop.eup %3019  ;;  %v1599_v38 = vmul.f32 %v3018_v14, %v3002_v44  ;;  %v2926_v14 = vld [vmem:[%s3745_s16 + $0x8] sm:$0xff]  }
0x119a   :  { %2644 = vmatpush3.bf16.msra.mxu1 %v1607_v4  ;;  %v1602_v27 = vpack.c.bf16 %v1597_v12, %v1596_v59  ;;  %v1598_v39 = vmul.f32 %v3020_v15, %v3597_v40  ;;  %v2922_v12 = vld [vmem:[%s3744_s15 + $0x8] sm:$0xff]   ;;  %v2924_v59 = vld [vmem:[%s3744_s15 + $0x18] sm:$0xff]  }
0x119b   :  { %2653 = vmatprep.subr.bf16.mxu1 %v3097_v7  ;;  %2668 = vmatpush3.bf16.msra.mxu0 %v2922_v12 }
0x119c   :  { %v1603_v16 = vpack.c.bf16 %v1599_v38, %v1598_v39  ;;  %2669 = vmatprep.subr.bf16.mxu0 %v3097_v7 }
0x119d   :  { %2646 = vmatmul.mubr.msk.bf16.vlgmr.msra.gmra.mrb[24].mxu1 %vm368_vm12, %v1601_v26  ;;  %v2925_v26 = vld [vmem:[%s3745_s16] sm:$0xff]  }
0x119e   :  { %2649 = vmatprep.mubr.msk.bf16.mxu1 %vm368_vm12, %v1602_v27  ;;  %2654 = vmatpush3.bf16.msra.mxu1 %v2917_v17 }
0x119f   :  { %2655 = vmatprep.subr.bf16.mxu1 %v3097_v7  ;;  %2670 = vmatpush3.bf16.msra.mxu0 %v2923_v13 }
0x11a0   :  { %2671 = vmatprep.subr.bf16.mxu0 %v3097_v7 }
0x11a2   :  { %2656 = vmatpush3.bf16.msra.mxu1 %v2918_v19 }
0x11a3   :  { %2657 = vmatprep.subr.bf16.mxu1 %v3097_v7  ;;  %2672 = vmatpush3.bf16.msra.mxu0 %v2924_v59 }
0x11a4   :  { %2697 = vmatprep.subr.bf16.mxu0 %v3097_v7 }
0x11a5   :  { %2650 = vmatmul.mubr.msk.bf16.gmra.mrb[28].mxu1 %vm368_vm12, %v1603_v16 }
0x11a6   :  { %2661 = vmatprep.mubr.msk.bf16.mxu1 %vm3098_vm2, %v3097_v7  ;;  %2658 = vmatpush3.bf16.msra.mxu1 %v2919_v5 }
0x11a7   :  { %2659 = vmatprep.subr.bf16.mxu1 %v3097_v7 }
0x11aa   :  { %2660 = vmatpush3.bf16.msra.mxu1 %v2920_v24 }
0x11ab   :  { %2677 = vmatprep.subr.bf16.mxu1 %v3097_v7 }
0x1270   :  { %v2647_v20 = vpop.f32.mrb[24].mxu1 }
0x1271   :  { %v1654_v21 = vpop.f32.mrb[25].mxu1 }
0x1272   :  { %v2648_v23 = vpop.f32.mrb[26].mxu1 }
0x1273   :  { %v2854_v25 = vpack.i.bf16 %v2648_v23, %v2647_v20  ;;  %v1657_v30 = vpop.f32.mrb[27].mxu1  ;;  %v2400_v20 = vld [vmem:[%s3746_s18] ss:$0 sm:$0xff] }
0x1275   :  { %2855 = vrot.lane.b32.xlu1 %v2854_v25, %s3103_s17  ;;  %v2401_v25 = vld [vmem:[%s3747_s22] ss:$0 sm:$0xff] }
0x1278   :  { %v2651_v32 = vpop.f32.mrb[28].mxu1 }
0x1279   :  { %v1670_v31 = vpop.f32.mrb[29].mxu1 }
0x127a   :  { %v2652_v33 = vpop.f32.mrb[30].mxu1 }
0x127b   :  { %v2864_v34 = vpack.i.bf16 %v2652_v33, %v2651_v32  ;;  %v1673_v35 = vpop.f32.mrb[31].mxu1 }
0x127c   :  { %v2859_v36 = vpack.i.bf16 %v1673_v35, %v1670_v31  ;;  %v2928_v35 = vld [vmem:[%s3745_s16 + $0x18] sm:$0xff]  }
0x127d   :  { %2865 = vrot.lane.b32.xlu1 %v2864_v34, %s3104_s21  ;;  %v2927_v34 = vld [vmem:[%s3745_s16 + $0x10] sm:$0xff]  }
0x127e   :  { %2860 = vrot.lane.b32.xlu0 %v2859_v36, %s3105_s25  ;;  %v2929_v36 = vld [vmem:[%s3745_s16 + $0x20] sm:$0xff]  }
0x12e7   :  { %v2856_v37 = vpop.permute.xlu1 %2855 }
0x12e8   :  { %v2858_v40 = vunpack.i.h.bf16 %v2856_v37  ;;  %v2857_v41 = vunpack.i.l.bf16 %v2856_v37  ;;  %v2930_v37 = vld [vmem:[%s3745_s16 + $0x28] sm:$0xff]  }
0x12ea   :  { %v1709_v47 = vsel %vm205_vm5, %v1654_v21, %v2857_v41  ;;  %v1710_v48 = vsel %vm205_vm5, %v1657_v30, %v2858_v40  ;;  %v2931_v40 = vld [vmem:[%s3745_s16 + $0x30] sm:$0xff]   ;;  %v2932_v41 = vld [vmem:[%s3745_s16 + $0x38] sm:$0xff]  }
0x12ef   :  { %v2866_v42 = vpop.permute.xlu1 %2865 }
0x12f0   :  { %v2861_v43 = vpop.permute.xlu0 %2860  ;;  %v2868_v45 = vunpack.i.h.bf16 %v2866_v42  ;;  %v2867_v2 = vunpack.i.l.bf16 %v2866_v42  ;;  %v2402_v42 = vld [vmem:[%s3748_s23] ss:$0 sm:$0xff] }
0x12f1   :  { %v2863_v44 = vunpack.i.h.bf16 %v2861_v43  ;;  %v2862_v46 = vunpack.i.l.bf16 %v2861_v43 }
0x12f3   :  { %v1712_v49 = vsel %vm871_vm13, %v1710_v48, %v2863_v44  ;;  %v1711_v50 = vsel %vm871_vm13, %v1709_v47, %v2862_v46 }
0x12f4   :  { %v1714_v51 = vsel %vm874_vm14, %v1712_v49, %v2868_v45  ;;  %v1713_v52 = vsel %vm874_vm14, %v1711_v50, %v2867_v2 }
0x12f5   :  { %v1723_v3 = vpack.c.bf16 %v1714_v51, %v1713_v52 }
0x12f7   :  { %2662 = vmatmul.mubr.msk.bf16.vlgmr.msra.gmra.mrb[32].mxu1 %vm368_vm12, %v1723_v3 }
0x12f8   :  { %2693 = vmatprep.mubr.msk.bf16.mxu1 %vm3098_vm2, %v3097_v7  ;;  %2678 = vmatpush3.bf16.msra.mxu1 %v2925_v26 }
0x12f9   :  { %2679 = vmatprep.subr.bf16.mxu1 %v3097_v7 }
0x12fc   :  { %2680 = vmatpush3.bf16.msra.mxu1 %v2926_v14  ;;  %v2933_v14 = vld [vmem:[%s3750_s28] sm:$0xff]  }
0x12fd   :  { %2681 = vmatprep.subr.bf16.mxu1 %v3097_v7 }
0x1300   :  { %2682 = vmatpush3.bf16.msra.mxu1 %v2927_v34 }
0x1301   :  { %2683 = vmatprep.subr.bf16.mxu1 %v3097_v7 }
0x1304   :  { %2684 = vmatpush3.bf16.msra.mxu1 %v2928_v35 }
0x1305   :  { %2685 = vmatprep.subr.bf16.mxu1 %v3097_v7 }
0x1308   :  { %2686 = vmatpush3.bf16.msra.mxu1 %v2929_v36 }
0x1309   :  { %2687 = vmatprep.subr.bf16.mxu1 %v3097_v7 }
0x130c   :  { %2688 = vmatpush3.bf16.msra.mxu1 %v2930_v37 }
0x130d   :  { %2689 = vmatprep.subr.bf16.mxu1 %v3097_v7 }
0x1310   :  { %2690 = vmatpush3.bf16.msra.mxu1 %v2931_v40 }
0x1311   :  { %2691 = vmatprep.subr.bf16.mxu1 %v3097_v7 }
0x1314   :  { %2692 = vmatpush3.bf16.msra.mxu1 %v2932_v41  ;;  %v2937_v41 = vld [vmem:[%s3290_s6] sm:$0xff]  }
0x13ca   :  { %v1792_v54 = vpop.f32.mrb[32].mxu1 }
0x13cb   :  { %v1793_v11 = vadd.f32 %v2394_v53, %v1792_v54  ;;  %v2663_v8 = vpop.f32.mrb[33].mxu1 }
0x13cc   :  { %v1795_v55 = vpop.f32.mrb[34].mxu1 }
0x13cd   :  { %v1796_v56 = vadd.f32 %v2394_v53, %v1795_v55  ;;  %v2664_v6 = vpop.f32.mrb[35].mxu1  ;;  %v1799_v10 = vadd.f32 %v1793_v11, %v3539_v57 }
0x13cf   :  { %v1803_v60 = vsel %vm368_vm12, %v1799_v10, 0.0  ;;  %v1800_v61 = vadd.f32 %v1796_v56, %v3541_v58  ;;  %v2408_v56 = vld [vmem:[%s3749_s26] ss:$0 sm:$0xff] }
0x13d0   :  { %1804 = vadd.xlane.f32.xlu0 %v1803_v60 }
0x13d1   :  { %v1806_v18 = vsel %vm368_vm12, %v1800_v61, 0.0 }
0x13d2   :  { %1807 = vadd.xlane.f32.xlu1 %v1806_v18 }
0x145d   :  { %v1805_v22 = vpop.xlane.xlu0 %1804 }
0x145e   :  { %v1809_v28 = vmul.f32 0.015625, %v1805_v22 }
0x145f   :  { %v1808_v63 = vpop.xlane.xlu1 %1807 }
0x1460   :  { %v1811_v0 = vsub.f32 %v1799_v10, %v1809_v28  ;;  %v1810_v1 = vmul.f32 0.015625, %v1808_v63 }
0x1462   :  { %v1812_v4 = vsub.f32 %v1800_v61, %v1810_v1  ;;  %v1813_v9 = vmul.f32 %v1811_v0, %v1811_v0 }
0x1464   :  { %v1815_v57 = vsel %vm368_vm12, %v1813_v9, 0.0  ;;  %v1814_v29 = vmul.f32 %v1812_v4, %v1812_v4 }
0x1465   :  { %1816 = vadd.xlane.f32.xlu0 %v1815_v57 }
0x1466   :  { %v1818_v58 = vsel %vm368_vm12, %v1814_v29, 0.0 }
0x1469   :  { %1819 = vadd.xlane.f32.xlu0 %v1818_v58 }
0x14f2   :  { %v1817_v27 = vpop.xlane.xlu0 %1816 }
0x14f3   :  { %v1821_v15 = vmul.f32 0.015625, %v1817_v27  ;;  %v2934_v27 = vld [vmem:[%s3750_s28 + $0x8] sm:$0xff]  }
0x14f5   :  { %v1823_v38 = vadd.f32 1e-12, %v1821_v15  ;;  %v2935_v15 = vld [vmem:[%s3750_s28 + $0x10] sm:$0xff]  }
0x14f6   :  { %v1820_v39 = vpop.xlane.xlu0 %1819 }
0x14f7   :  { %3021 = vrsqrt.f32 %v1823_v38  ;;  %v1822_v16 = vmul.f32 0.015625, %v1820_v39  ;;  %v2936_v38 = vld [vmem:[%s3750_s28 + $0x18] sm:$0xff]  }
0x14f9   :  { %v1824_v17 = vadd.f32 1e-12, %v1822_v16 }
0x14fb   :  { %3023 = vrsqrt.f32 %v1824_v17 }
0x1501   :  { %v3022_v19 = vpop.eup %3021 }
0x1502   :  { %v1827_v5 = vmul.f32 %v3022_v19, %v1811_v0 }
0x1504   :  { %v1835_v23 = vmul.f32 %v2400_v20, %v1827_v5 }
0x1505   :  { %v3024_v21 = vpop.eup %3023 }
0x1506   :  { %v1828_v24 = vmul.f32 %v3024_v21, %v1812_v4  ;;  %v1843_v32 = vadd.f32 %v2401_v25, %v1835_v23 }
0x1508   :  { %v1836_v30 = vmul.f32 %v2400_v20, %v1828_v24 }
0x150a   :  { %v1844_v31 = vadd.f32 %v2401_v25, %v1836_v30  ;;  %v2417_v25 = vld [vmem:[%s3751_s1] ss:$0 sm:$0xff] }
0x150c   :  { %v1853_v33 = vpack.c.bf16 %v1844_v31, %v1843_v32 }
0x150e   :  { %2674 = vmatmul.mubr.msk.bf16.vlgmr.msra.gmra.mrb[28].mxu0 %vm368_vm12, %v1853_v33  ;;  %v2418_v33 = vld [vmem:[%s3752_s2] ss:$0 sm:$0xff] }
0x150f   :  { %2705 = vmatprep.mubr.msk.bf16.mxu0 %vm3098_vm2, %v3097_v7  ;;  %2698 = vmatpush3.bf16.msra.mxu0 %v2933_v14 }
0x1510   :  { %2699 = vmatprep.subr.bf16.mxu0 %v3097_v7 }
0x1513   :  { %2700 = vmatpush3.bf16.msra.mxu0 %v2934_v27 }
0x1514   :  { %2701 = vmatprep.subr.bf16.mxu0 %v3097_v7 }
0x1517   :  { %2702 = vmatpush3.bf16.msra.mxu0 %v2935_v15 }
0x1518   :  { %2703 = vmatprep.subr.bf16.mxu0 %v3097_v7 }
0x151b   :  { %2704 = vmatpush3.bf16.msra.mxu0 %v2936_v38 }
0x151c   :  { %2709 = vmatprep.subr.bf16.mxu0 %v3097_v7 }
0x15e1   :  { %v1922_v43 = vpop.f32.mrb[28].mxu0 }
0x15e2   :  { %v1923_v44 = vadd.f32 %v2402_v42, %v1922_v43  ;;  %v2675_v46 = vpop.f32.mrb[29].mxu0  ;;  %v2939_v43 = vld [vmem:[%s3290_s6 + $0x10] sm:$0xff]  }
0x15e3   :  { %v1925_v47 = vpop.f32.mrb[30].mxu0  ;;  %v2419_v46 = vld [vmem:[%s3285_s12] ss:$0 sm:$0xff] }
0x15e4   :  { %v1931_v48 = vmul.f32 0.70710677, %v1923_v44  ;;  %v1926_v45 = vadd.f32 %v2402_v42, %v1925_v47  ;;  %v2676_v2 = vpop.f32.mrb[31].mxu0  ;;  %v1929_v3 = vmul.f32 0.5, %v1923_v44  ;;  %v2938_v42 = vld [vmem:[%s3290_s6 + $0x8] sm:$0xff]   ;;  %v2940_v44 = vld [vmem:[%s3290_s6 + $0x18] sm:$0xff]  }
0x15e5   :  { %s3035_s6 = scalar_lea.vmem %s2279_s5, 32 }
0x15e6   :  { %3025 = verf.f32 %v1931_v48  ;;  %v1932_v49 = vmul.f32 0.70710677, %v1926_v45  ;;  %v1930_v53 = vmul.f32 0.5, %v1926_v45  ;;  %p3036_p0 = scmp.ne.s32.totalorder %s2279_s5, %s3035_s6  ;;  %p3041_p2 = scmp.lt.s32.totalorder %s3035_s6, %s3035_s6 }
0x15e8   :  { %3027 = verf.f32 %v1932_v49  ;;  %p3042_p3 = por %p3041_p2, %p3040_p1 }
0x15ea   :  { %p3043_p4 = pnand %p3042_p3, %p3036_p0 }
0x15f0   :  { %v3026_v50 = vpop.eup %3025 }
0x15f1   :  { %v1935_v51 = vadd.f32 1.0, %v3026_v50 }
0x15f2   :  { %v3028_v52 = vpop.eup %3027 }
0x15f3   :  { %v1936_v54 = vadd.f32 1.0, %v3028_v52  ;;  %v1937_v11 = vmul.f32 %v1935_v51, %v1929_v3  ;;  %v2425_v52 = vld [vmem:[%s3295_s27] ss:$0 sm:$0xff] }
0x15f5   :  { %v1938_v8 = vmul.f32 %v1936_v54, %v1930_v53 }
0x15f7   :  { %v1955_v55 = vpack.c.bf16 %v1938_v8, %v1937_v11 }
0x15f9   :  { %2694 = vmatmul.mubr.bf16.vlgmr.msra.gmra.mrb[36].mxu1 %v1955_v55 }
0x16cc   :  { %v2045_v6 = vpop.f32.mrb[36].mxu1 }
0x16cd   :  { %v2046_v10 = vadd.f32 %v2408_v56, %v2045_v6  ;;  %v2695_v60 = vpop.f32.mrb[37].mxu1 }
0x16ce   :  { %v2048_v61 = vpop.f32.mrb[38].mxu1 }
0x16cf   :  { %v2049_v18 = vadd.f32 %v2408_v56, %v2048_v61  ;;  %v2696_v22 = vpop.f32.mrb[39].mxu1  ;;  %v2052_v28 = vadd.f32 %v2046_v10, %v1843_v32 }
0x16d1   :  { %v2056_v63 = vsel %vm368_vm12, %v2052_v28, 0.0  ;;  %v2053_v0 = vadd.f32 %v2049_v18, %v1844_v31 }
0x16d2   :  { %2057 = vadd.xlane.f32.xlu0 %v2056_v63 }
0x16d3   :  { %v2059_v1 = vsel %vm368_vm12, %v2053_v0, 0.0 }
0x16d4   :  { %2060 = vadd.xlane.f32.xlu1 %v2059_v1 }
0x175f   :  { %v2058_v4 = vpop.xlane.xlu0 %2057 }
0x1760   :  { %v2062_v9 = vmul.f32 0.015625, %v2058_v4 }
0x1761   :  { %v2061_v57 = vpop.xlane.xlu1 %2060 }
0x1762   :  { %v2064_v29 = vsub.f32 %v2052_v28, %v2062_v9  ;;  %v2063_v58 = vmul.f32 0.015625, %v2061_v57 }
0x1764   :  { %v2065_v62 = vsub.f32 %v2053_v0, %v2063_v58  ;;  %v2066_v12 = vmul.f32 %v2064_v29, %v2064_v29 }
0x1766   :  { %v2068_v13 = vsel %vm368_vm12, %v2066_v12, 0.0  ;;  %v2067_v59 = vmul.f32 %v2065_v62, %v2065_v62 }
0x1767   :  { %2069 = vadd.xlane.f32.xlu0 %v2068_v13 }
0x1768   :  { %v2071_v26 = vsel %vm368_vm12, %v2067_v59, 0.0 }
0x1769   :  { %2072 = vadd.xlane.f32.xlu1 %v2071_v26 }
0x17f4   :  { %v2070_v39 = vpop.xlane.xlu0 %2069 }
0x17f5   :  { %v2074_v16 = vmul.f32 0.015625, %v2070_v39 }
0x17f6   :  { %v2073_v17 = vpop.xlane.xlu1 %2072 }
0x17f7   :  { %v2076_v19 = vadd.f32 1e-12, %v2074_v16  ;;  %v2075_v5 = vmul.f32 0.015625, %v2073_v17 }
0x17f9   :  { %3029 = vrsqrt.f32 %v2076_v19  ;;  %v2077_v20 = vadd.f32 1e-12, %v2075_v5 }
0x17fb   :  { %3031 = vrsqrt.f32 %v2077_v20 }
0x1803   :  { %v3030_v21 = vpop.eup %3029 }
0x1804   :  { %v2080_v23 = vmul.f32 %v3030_v21, %v2064_v29 }
0x1805   :  { %v3032_v24 = vpop.eup %3031 }
0x1806   :  { %v2081_v30 = vmul.f32 %v3032_v24, %v2065_v62  ;;  %v2088_v32 = vmul.f32 %v2417_v25, %v2080_v23 }
0x1808   :  { %v2089_v31 = vmul.f32 %v2417_v25, %v2081_v30  ;;  %v2096_v35 = vadd.f32 %v2418_v33, %v2088_v32 }
0x180a   :  { %v2097_v34 = vadd.f32 %v2418_v33, %v2089_v31 }
0x180c   :  { %v2099_v36 = vrot.slane %v2097_v34, 7 }
0x180e   :  { %v2102_v37 = vsel %vm2101_vm15, %v2096_v35, %v2099_v36 }
0x180f   :  { %v2111_v40 = vpack.c.bf16 %v2102_v37, %v2102_v37 }
0x1811   :  { %2706 = vmatmul.mubr.msk.bf16.vlgmr.msra.gmra.mrb[32].mxu0 %vm368_vm12, %v2111_v40 }
0x1812   :  { %2717 = vmatprep.mubr.msk.bf16.mxu0 %vm3098_vm2, %v3097_v7  ;;  %2710 = vmatpush3.bf16.msra.mxu0 %v2937_v41 }
0x1813   :  { %2711 = vmatprep.subr.bf16.mxu0 %v3097_v7 }
0x1816   :  { %2712 = vmatpush3.bf16.msra.mxu0 %v2938_v42 }
0x1817   :  { %2713 = vmatprep.subr.bf16.mxu0 %v3097_v7 }
0x181a   :  { %2714 = vmatpush3.bf16.msra.mxu0 %v2939_v43 }
0x181b   :  { %2715 = vmatprep.subr.bf16.mxu0 %v3097_v7 }
0x181e   :  { %2716 = vmatpush3.bf16.msra.mxu0 %v2940_v44 }
0x18e4   :  { %v2180_v47 = vpop.f32.mrb[32].mxu0 }
0x18e5   :  { %v2181_v48 = vadd.f32 %v2419_v46, %v2180_v47  ;;  %v2707_v45 = vpop.f32.mrb[33].mxu0 }
0x18e6   :  { %v2183_v2 = vpop.f32.mrb[34].mxu0 }
0x18e7   :  { %3033 = vtanh.f32 %v2181_v48  ;;  %v2708_v49 = vpop.f32.mrb[35].mxu0 }
0x18f1   :  { %v3034_v50 = vpop.eup %3033 }
0x18f2   :  { %v2195_v51 = vpack.c.bf16 %v3034_v50, %v3034_v50 }
0x18f4   :  { %2718 = vmatmul.mubr.msk.bf16.vlgmr.msra.gmra.mrb[36].mxu0 %vm368_vm12, %v2195_v51 }
0x19c7   :  { %v2264_v3 = vpop.f32.mrb[36].mxu0 }
0x19c8   :  { %v2265_v53 = vadd.f32 %v2425_v52, %v2264_v3  ;;  %v2719_v7 = vpop.f32.mrb[37].mxu0 }
0x19c9   :  { %v2267_v54 = vpop.f32.mrb[38].mxu0 }
0x19ca   :  { %v2720_v11 = vpop.f32.mrb[39].mxu0  ;;  %2271 = vst.msk [vmem:[#allocation2] sm:$0x3] %vm2270_vm0, %v2265_v53 }
0x19cb   :  { %3046 = shalt.err (!%p3043_p4)
}
0x19cc   :  { %s3047_s12 = scalar_lea.hbm %s3300_s4, 32 }
0x19cd   :  { %p3048_p5 = scmp.ne.s32.totalorder %s3300_s4, %s3047_s12  ;;  %p3051_p6 = scmp.lt.u32.totalorder %s3047_s12, %s3300_s4 }
0x19cf   :  { %p3053_p7 = pnand %p3051_p6, %p3048_p5 }
0x19d1   :  { %3056 = shalt.err (!%p3053_p7)
}
0x19d2   :  { %2281 = dma.vmem_to_hbm [thread:$0]  %s2279_s5, 32, %s3300_s4, [#allocation3]  }
0x19d3   :  { %3057 = dma.done.wait [#allocation3], 32  }
0x19d4   :  { %3058 = vsyncadd [#allocation3], 4294967264 }
0x19d5   :  { %2285 = vsyncpa [#allocation3], 1 }

</bundles_post_ra>
